<compile_context>
chip_gen: v7x
topology: tpu7x:2x2x1
jax: 0.10.0
libtpu: 0.0.40
codegen_flags: <defaults>
</compile_context>

<pallas_src>
import jax
import jax.numpy as jnp
from jax import lax
from jax.experimental import pallas as pl
from jax.experimental.pallas import tpu as pltpu


def _make_cbam_kernel(w_dim):
    """Builds the kernel; `w_dim` (image width) is static for the roll shifts."""

    def kernel(x_ref, wfc_ref, bfc_ref, wmask_ref, o_ref):
        C = x_ref.shape[1]
        HW = x_ref.shape[2]

        x2d = x_ref[0]                                            # (C, HW)

        # ---- Channel attention: ca = sigmoid(W @ avgpool(x) + b) ----------
        pooled = jnp.sum(x2d, axis=1, keepdims=True) * (1.0 / HW)  # (C, 1)
        # Tiny (C,1)->(1,C) relayout without a transpose op: mask onto a
        # diagonal and sublane-reduce (exact; O(C^2) but negligible here).
        eq = (lax.broadcasted_iota(jnp.int32, (C, C), 0) ==
              lax.broadcasted_iota(jnp.int32, (C, C), 1))
        pooled_row = jnp.sum(jnp.where(eq, pooled, 0.0), axis=0,
                             keepdims=True)                       # (1, C)
        # 1x1-conv fc as broadcast-mul + lane reduce.
        # (For production-sized C, switch to jnp.dot(...) on the MXU.)
        y = jnp.sum(wfc_ref[...] * pooled_row, axis=1, keepdims=True)
        y = y + bfc_ref[...]                                      # (C, 1)
        ca = 1.0 / (1.0 + jnp.exp(-y))                            # sigmoid

        xc = x2d * ca                                             # (C, HW)

        # ---- Spatial attention: sa = sigmoid(conv7x7([mean_c, max_c])) ----
        mean_c = jnp.mean(xc, axis=0, keepdims=True)              # (1, HW)
        max_c = jnp.max(xc, axis=0, keepdims=True)                # (1, HW)
        # Stack [mean; max] on sublanes so each roll shifts both maps at once.
        row0 = lax.broadcasted_iota(jnp.int32, (2, HW), 0) == 0
        s = jnp.where(row0, mean_c, max_c)                        # (2, HW)

        # Per tap: one lane-roll of (2, HW) + one multiply-add against the
        # precomputed weight*boundary-mask slab (weights already folded in).
        acc2 = jnp.zeros((2, HW), jnp.float32)
        for di in range(7):
            ki = di - 3
            for dj in range(7):
                kj = dj - 3
                shift = ki * w_dim + kj
                sh = s if shift == 0 else pltpu.roll(s, (-shift) % HW, axis=1)
                k = di * 7 + dj
                acc2 = acc2 + wmask_ref[k] * sh                   # (2, HW)
        # Single sublane reduction over {mean-tap, max-tap} contributions.
        acc = acc2[0:1, :] + acc2[1:2, :]                         # (1, HW)
        sa = 1.0 / (1.0 + jnp.exp(-acc))                          # sigmoid

        # ---- out = (x * ca) * sa ------------------------------------------
        o_ref[0] = (xc * sa).astype(o_ref.dtype)

    return kernel


def cbam_forward(x, w_fc, b_fc, w_sp):
    """x: (B, C, H, W) f32; w_fc: (C, C); b_fc: (C,); w_sp: (1, 2, 7, 7)."""
    B, C, H, W = x.shape
    HW = H * W

    x2 = x.astype(jnp.float32).reshape(B, C, HW)          # free, lane-dense view
    w_fc_f = w_fc.astype(jnp.float32)
    b_col = b_fc.reshape(C, 1).astype(jnp.float32)

    # Per-tap boundary (zero-padding) masks for the 7x7 conv, flattened to lanes,
    # with the conv weights folded in: wmask[k, ci, p] = mask_k(p) * w_sp[0, ci, k].
    # Computed once per call (batch-invariant), reused by every grid step.
    ii = jnp.arange(H).reshape(H, 1)
    jj = jnp.arange(W).reshape(1, W)
    masks = []
    for di in range(7):
        ki = di - 3
        for dj in range(7):
            kj = dj - 3
            m = ((ii + ki >= 0) & (ii + ki < H) &
                 (jj + kj >= 0) & (jj + kj < W))
            masks.append(m.reshape(1, HW))
    tap_mask = jnp.concatenate(masks, axis=0).astype(jnp.float32)   # (49, HW)
    w_pair = w_sp.reshape(2, 49).astype(jnp.float32)                # (2, 49)
    wmask = tap_mask[:, None, :] * jnp.transpose(w_pair)[:, :, None]  # (49, 2, HW)

    kernel = _make_cbam_kernel(W)

    out = pl.pallas_call(
        kernel,
        out_shape=jax.ShapeDtypeStruct((B, C, HW), jnp.float32),
        grid=(B,),
        in_specs=[
            pl.BlockSpec((1, C, HW), lambda b: (b, 0, 0)),
            pl.BlockSpec((C, C), lambda b: (0, 0)),
            pl.BlockSpec((C, 1), lambda b: (0, 0)),
            pl.BlockSpec((49, 2, HW), lambda b: (0, 0, 0)),
        ],
        out_specs=pl.BlockSpec((1, C, HW), lambda b: (b, 0, 0)),
        compiler_params=pltpu.CompilerParams(
            dimension_semantics=("parallel",)),
    )(x2, w_fc_f, b_col, wmask)

    return out.reshape(B, C, H, W)


def cbam_reference(x, w_fc, b_fc, w_sp):
    # Pure-JAX reference mirroring the PyTorch module (NCHW).
    pooled = jnp.mean(x, axis=(2, 3), keepdims=True)                # (B,C,1,1)
    y = jnp.einsum('oc,bcij->boij', w_fc, pooled) + b_fc.reshape(1, -1, 1, 1)
    xc = x * jax.nn.sigmoid(y)
    s_in = jnp.concatenate([jnp.mean(xc, axis=1, keepdims=True),
                            jnp.max(xc, axis=1, keepdims=True)], axis=1)
    att = lax.conv_general_dilated(
        s_in, w_sp, window_strides=(1, 1), padding=((3, 3), (3, 3)),
        dimension_numbers=('NCHW', 'OIHW', 'NCHW'))
    return xc * jax.nn.sigmoid(att)


if __name__ == "__main__":
    key = jax.random.PRNGKey(0)
    kx, kw, kb, ks = jax.random.split(key, 4)
    B, C, H, W = 2, 4, 16, 16

    x = jax.random.normal(kx, (B, C, H, W), jnp.float32)
    # Deterministic synthetic parameters (shapes from the module __init__):
    w_fc = jax.random.normal(kw, (C, C), jnp.float32) * 0.5        # Conv2d(C,C,1) weight
    b_fc = jax.random.normal(kb, (C,), jnp.float32) * 0.1          # Conv2d(C,C,1) bias
    w_sp = jax.random.normal(ks, (1, 2, 7, 7), jnp.float32) * 0.2  # Conv2d(2,1,7,pad=3,bias=False)

    out = jax.block_until_ready(cbam_forward(x, w_fc, b_fc, w_sp))
    ref = jax.block_until_ready(cbam_reference(x, w_fc, b_fc, w_sp))

    assert out.shape == (B, C, H, W)
    max_err = float(jnp.max(jnp.abs(out - ref)))
    assert jnp.allclose(out, ref, atol=2e-5, rtol=2e-5), f"max_err={max_err}"
    print("KERNEL_OK")
</pallas_src>

<mosaic_0001>
module attributes {stable_mosaic.version = 11 : i64} {
  func.func @kernel(%arg0: i32, %arg1: memref<1x4x256xf32, #tpu.memory_space<vmem>>, %arg2: memref<4x4xf32, #tpu.memory_space<vmem>>, %arg3: memref<4x1xf32, #tpu.memory_space<vmem>>, %arg4: memref<49x2x256xf32, #tpu.memory_space<vmem>>, %arg5: memref<1x4x256xf32, #tpu.memory_space<vmem>>) attributes {dimension_semantics = [#tpu.dimension_semantics<parallel>], iteration_bounds = array<i64: 2>, scalar_prefetch = 0 : i64, scratch_operands = 0 : i64, tpu.core_type = #tpu.core_type<tc>, window_params = [{transform_indices = @transform_0, window_bounds = array<i64: 1, 4, 256>}, {pipeline_mode = #tpu.pipeline_mode<synchronous>, transform_indices = @transform_1, window_bounds = array<i64: 4, 4>}, {pipeline_mode = #tpu.pipeline_mode<synchronous>, transform_indices = @transform_2, window_bounds = array<i64: 4, 1>}, {pipeline_mode = #tpu.pipeline_mode<synchronous>, transform_indices = @transform_3, window_bounds = array<i64: 49, 2, 256>}, {transform_indices = @transform_4, window_bounds = array<i64: 1, 4, 256>}]} {
    %c0 = arith.constant 0 : index
    %c0_0 = arith.constant 0 : index
    %c0_1 = arith.constant 0 : index
    %0 = vector.load %arg1[%c0, %c0_0, %c0_1] : memref<1x4x256xf32, #tpu.memory_space<vmem>>, vector<1x4x256xf32>
    %1 = vector.shape_cast %0 : vector<1x4x256xf32> to vector<4x256xf32>
    %cst = arith.constant dense<0.000000e+00> : vector<4xf32>
    %2 = vector.multi_reduction <add>, %1, %cst [1] : vector<4x256xf32> to vector<4xf32>
    %3 = vector.shape_cast %2 : vector<4xf32> to vector<4x1xf32>
    %cst_2 = arith.constant 3.906250e-03 : f32
    %4 = vector.broadcast %cst_2 : f32 to vector<4x1xf32>
    %5 = arith.mulf %3, %4 : vector<4x1xf32>
    %6 = tpu.iota {dimensions = array<i32: 0>} : vector<4x4xi32>
    %7 = tpu.iota {dimensions = array<i32: 1>} : vector<4x4xi32>
    %8 = arith.cmpi eq, %6, %7 : vector<4x4xi32>
    %cst_3 = arith.constant 0.000000e+00 : f32
    %9 = vector.shape_cast %5 : vector<4x1xf32> to vector<4x1xf32>
    %10 = vector.broadcast %9 : vector<4x1xf32> to vector<4x4xf32>
    %11 = vector.broadcast %cst_3 : f32 to vector<4x4xf32>
    %12 = arith.select %8, %10, %11 : vector<4x4xi1>, vector<4x4xf32>
    %cst_4 = arith.constant dense<0.000000e+00> : vector<4xf32>
    %13 = vector.multi_reduction <add>, %12, %cst_4 [0] : vector<4x4xf32> to vector<4xf32>
    %14 = vector.shape_cast %13 : vector<4xf32> to vector<1x4xf32>
    %c0_5 = arith.constant 0 : index
    %c0_6 = arith.constant 0 : index
    %15 = vector.load %arg2[%c0_5, %c0_6] : memref<4x4xf32, #tpu.memory_space<vmem>>, vector<4x4xf32>
    %16 = vector.broadcast %14 : vector<1x4xf32> to vector<4x4xf32>
    %17 = arith.mulf %15, %16 : vector<4x4xf32>
    %cst_7 = arith.constant dense<0.000000e+00> : vector<4xf32>
    %18 = vector.multi_reduction <add>, %17, %cst_7 [1] : vector<4x4xf32> to vector<4xf32>
    %19 = vector.shape_cast %18 : vector<4xf32> to vector<4x1xf32>
    %c0_8 = arith.constant 0 : index
    %c0_9 = arith.constant 0 : index
    %20 = vector.load %arg3[%c0_8, %c0_9] : memref<4x1xf32, #tpu.memory_space<vmem>>, vector<4x1xf32>
    %21 = arith.addf %19, %20 : vector<4x1xf32>
    %cst_10 = arith.constant 0.000000e+00 : f32
    %22 = vector.broadcast %cst_10 : f32 to vector<4x1xf32>
    %23 = arith.subf %22, %21 : vector<4x1xf32>
    %24 = math.exp %23 : vector<4x1xf32>
    %cst_11 = arith.constant 1.000000e+00 : f32
    %25 = vector.broadcast %cst_11 : f32 to vector<4x1xf32>
    %26 = arith.addf %25, %24 : vector<4x1xf32>
    %cst_12 = arith.constant 1.000000e+00 : f32
    %27 = vector.broadcast %cst_12 : f32 to vector<4x1xf32>
    %28 = arith.divf %27, %26 : vector<4x1xf32>
    %29 = vector.broadcast %28 : vector<4x1xf32> to vector<4x256xf32>
    %30 = arith.mulf %1, %29 : vector<4x256xf32>
    %cst_13 = arith.constant dense<0.000000e+00> : vector<256xf32>
    %31 = vector.multi_reduction <add>, %30, %cst_13 [0] : vector<4x256xf32> to vector<256xf32>
    %32 = vector.shape_cast %31 : vector<256xf32> to vector<1x256xf32>
    %cst_14 = arith.constant 4.000000e+00 : f32
    %33 = vector.broadcast %cst_14 : f32 to vector<1x256xf32>
    %34 = arith.divf %32, %33 : vector<1x256xf32>
    %cst_15 = arith.constant dense<0xFF800000> : vector<256xf32>
    %35 = vector.multi_reduction <maximumf>, %30, %cst_15 [0] : vector<4x256xf32> to vector<256xf32>
    %36 = vector.shape_cast %35 : vector<256xf32> to vector<1x256xf32>
    %37 = tpu.iota {dimensions = array<i32: 0>} : vector<2x256xi32>
    %c0_i32 = arith.constant 0 : i32
    %38 = vector.broadcast %c0_i32 : i32 to vector<2x256xi32>
    %39 = arith.cmpi eq, %37, %38 : vector<2x256xi32>
    %40 = vector.shape_cast %34 : vector<1x256xf32> to vector<1x256xf32>
    %41 = vector.broadcast %40 : vector<1x256xf32> to vector<2x256xf32>
    %42 = vector.shape_cast %36 : vector<1x256xf32> to vector<1x256xf32>
    %43 = vector.broadcast %42 : vector<1x256xf32> to vector<2x256xf32>
    %44 = arith.select %39, %41, %43 : vector<2x256xi1>, vector<2x256xf32>
    %cst_16 = arith.constant 0.000000e+00 : f32
    %45 = vector.broadcast %cst_16 : f32 to vector<2x256xf32>
    %c51_i32 = arith.constant 51 : i32
    %46 = tpu.dynamic_rotate %44 by %c51_i32 dim 1 : vector<2x256xf32>, i32 -> vector<2x256xf32>
    %c0_17 = arith.constant 0 : index
    %c0_18 = arith.constant 0 : index
    %c0_19 = arith.constant 0 : index
    %47 = vector.load %arg4[%c0_17, %c0_18, %c0_19] : memref<49x2x256xf32, #tpu.memory_space<vmem>>, vector<1x2x256xf32>
    %48 = vector.shape_cast %47 : vector<1x2x256xf32> to vector<2x256xf32>
    %49 = arith.mulf %48, %46 : vector<2x256xf32>
    %50 = arith.addf %45, %49 : vector<2x256xf32>
    %c50_i32 = arith.constant 50 : i32
    %51 = tpu.dynamic_rotate %44 by %c50_i32 dim 1 : vector<2x256xf32>, i32 -> vector<2x256xf32>
    %c1 = arith.constant 1 : index
    %c0_20 = arith.constant 0 : index
    %c0_21 = arith.constant 0 : index
    %52 = vector.load %arg4[%c1, %c0_20, %c0_21] : memref<49x2x256xf32, #tpu.memory_space<vmem>>, vector<1x2x256xf32>
    %53 = vector.shape_cast %52 : vector<1x2x256xf32> to vector<2x256xf32>
    %54 = arith.mulf %53, %51 : vector<2x256xf32>
    %55 = arith.addf %50, %54 : vector<2x256xf32>
    %c49_i32 = arith.constant 49 : i32
    %56 = tpu.dynamic_rotate %44 by %c49_i32 dim 1 : vector<2x256xf32>, i32 -> vector<2x256xf32>
    %c2 = arith.constant 2 : index
    %c0_22 = arith.constant 0 : index
    %c0_23 = arith.constant 0 : index
    %57 = vector.load %arg4[%c2, %c0_22, %c0_23] : memref<49x2x256xf32, #tpu.memory_space<vmem>>, vector<1x2x256xf32>
    %58 = vector.shape_cast %57 : vector<1x2x256xf32> to vector<2x256xf32>
    %59 = arith.mulf %58, %56 : vector<2x256xf32>
    %60 = arith.addf %55, %59 : vector<2x256xf32>
    %c48_i32 = arith.constant 48 : i32
    %61 = tpu.dynamic_rotate %44 by %c48_i32 dim 1 : vector<2x256xf32>, i32 -> vector<2x256xf32>
    %c3 = arith.constant 3 : index
    %c0_24 = arith.constant 0 : index
    %c0_25 = arith.constant 0 : index
    %62 = vector.load %arg4[%c3, %c0_24, %c0_25] : memref<49x2x256xf32, #tpu.memory_space<vmem>>, vector<1x2x256xf32>
    %63 = vector.shape_cast %62 : vector<1x2x256xf32> to vector<2x256xf32>
    %64 = arith.mulf %63, %61 : vector<2x256xf32>
    %65 = arith.addf %60, %64 : vector<2x256xf32>
    %c47_i32 = arith.constant 47 : i32
    %66 = tpu.dynamic_rotate %44 by %c47_i32 dim 1 : vector<2x256xf32>, i32 -> vector<2x256xf32>
    %c4 = arith.constant 4 : index
    %c0_26 = arith.constant 0 : index
    %c0_27 = arith.constant 0 : index
    %67 = vector.load %arg4[%c4, %c0_26, %c0_27] : memref<49x2x256xf32, #tpu.memory_space<vmem>>, vector<1x2x256xf32>
    %68 = vector.shape_cast %67 : vector<1x2x256xf32> to vector<2x256xf32>
    %69 = arith.mulf %68, %66 : vector<2x256xf32>
    %70 = arith.addf %65, %69 : vector<2x256xf32>
    %c46_i32 = arith.constant 46 : i32
    %71 = tpu.dynamic_rotate %44 by %c46_i32 dim 1 : vector<2x256xf32>, i32 -> vector<2x256xf32>
    %c5 = arith.constant 5 : index
    %c0_28 = arith.constant 0 : index
    %c0_29 = arith.constant 0 : index
    %72 = vector.load %arg4[%c5, %c0_28, %c0_29] : memref<49x2x256xf32, #tpu.memory_space<vmem>>, vector<1x2x256xf32>
    %73 = vector.shape_cast %72 : vector<1x2x256xf32> to vector<2x256xf32>
    %74 = arith.mulf %73, %71 : vector<2x256xf32>
    %75 = arith.addf %70, %74 : vector<2x256xf32>
    %c45_i32 = arith.constant 45 : i32
    %76 = tpu.dynamic_rotate %44 by %c45_i32 dim 1 : vector<2x256xf32>, i32 -> vector<2x256xf32>
    %c6 = arith.constant 6 : index
    %c0_30 = arith.constant 0 : index
    %c0_31 = arith.constant 0 : index
    %77 = vector.load %arg4[%c6, %c0_30, %c0_31] : memref<49x2x256xf32, #tpu.memory_space<vmem>>, vector<1x2x256xf32>
    %78 = vector.shape_cast %77 : vector<1x2x256xf32> to vector<2x256xf32>
    %79 = arith.mulf %78, %76 : vector<2x256xf32>
    %80 = arith.addf %75, %79 : vector<2x256xf32>
    %c35_i32 = arith.constant 35 : i32
    %81 = tpu.dynamic_rotate %44 by %c35_i32 dim 1 : vector<2x256xf32>, i32 -> vector<2x256xf32>
    %c7 = arith.constant 7 : index
    %c0_32 = arith.constant 0 : index
    %c0_33 = arith.constant 0 : index
    %82 = vector.load %arg4[%c7, %c0_32, %c0_33] : memref<49x2x256xf32, #tpu.memory_space<vmem>>, vector<1x2x256xf32>
    %83 = vector.shape_cast %82 : vector<1x2x256xf32> to vector<2x256xf32>
    %84 = arith.mulf %83, %81 : vector<2x256xf32>
    %85 = arith.addf %80, %84 : vector<2x256xf32>
    %c34_i32 = arith.constant 34 : i32
    %86 = tpu.dynamic_rotate %44 by %c34_i32 dim 1 : vector<2x256xf32>, i32 -> vector<2x256xf32>
    %c8 = arith.constant 8 : index
    %c0_34 = arith.constant 0 : index
    %c0_35 = arith.constant 0 : index
    %87 = vector.load %arg4[%c8, %c0_34, %c0_35] : memref<49x2x256xf32, #tpu.memory_space<vmem>>, vector<1x2x256xf32>
    %88 = vector.shape_cast %87 : vector<1x2x256xf32> to vector<2x256xf32>
    %89 = arith.mulf %88, %86 : vector<2x256xf32>
    %90 = arith.addf %85, %89 : vector<2x256xf32>
    %c33_i32 = arith.constant 33 : i32
    %91 = tpu.dynamic_rotate %44 by %c33_i32 dim 1 : vector<2x256xf32>, i32 -> vector<2x256xf32>
    %c9 = arith.constant 9 : index
    %c0_36 = arith.constant 0 : index
    %c0_37 = arith.constant 0 : index
    %92 = vector.load %arg4[%c9, %c0_36, %c0_37] : memref<49x2x256xf32, #tpu.memory_space<vmem>>, vector<1x2x256xf32>
    %93 = vector.shape_cast %92 : vector<1x2x256xf32> to vector<2x256xf32>
    %94 = arith.mulf %93, %91 : vector<2x256xf32>
    %95 = arith.addf %90, %94 : vector<2x256xf32>
    %c32_i32 = arith.constant 32 : i32
    %96 = tpu.dynamic_rotate %44 by %c32_i32 dim 1 : vector<2x256xf32>, i32 -> vector<2x256xf32>
    %c10 = arith.constant 10 : index
    %c0_38 = arith.constant 0 : index
    %c0_39 = arith.constant 0 : index
    %97 = vector.load %arg4[%c10, %c0_38, %c0_39] : memref<49x2x256xf32, #tpu.memory_space<vmem>>, vector<1x2x256xf32>
    %98 = vector.shape_cast %97 : vector<1x2x256xf32> to vector<2x256xf32>
    %99 = arith.mulf %98, %96 : vector<2x256xf32>
    %100 = arith.addf %95, %99 : vector<2x256xf32>
    %c31_i32 = arith.constant 31 : i32
    %101 = tpu.dynamic_rotate %44 by %c31_i32 dim 1 : vector<2x256xf32>, i32 -> vector<2x256xf32>
    %c11 = arith.constant 11 : index
    %c0_40 = arith.constant 0 : index
    %c0_41 = arith.constant 0 : index
    %102 = vector.load %arg4[%c11, %c0_40, %c0_41] : memref<49x2x256xf32, #tpu.memory_space<vmem>>, vector<1x2x256xf32>
    %103 = vector.shape_cast %102 : vector<1x2x256xf32> to vector<2x256xf32>
    %104 = arith.mulf %103, %101 : vector<2x256xf32>
    %105 = arith.addf %100, %104 : vector<2x256xf32>
    %c30_i32 = arith.constant 30 : i32
    %106 = tpu.dynamic_rotate %44 by %c30_i32 dim 1 : vector<2x256xf32>, i32 -> vector<2x256xf32>
    %c12 = arith.constant 12 : index
    %c0_42 = arith.constant 0 : index
    %c0_43 = arith.constant 0 : index
    %107 = vector.load %arg4[%c12, %c0_42, %c0_43] : memref<49x2x256xf32, #tpu.memory_space<vmem>>, vector<1x2x256xf32>
    %108 = vector.shape_cast %107 : vector<1x2x256xf32> to vector<2x256xf32>
    %109 = arith.mulf %108, %106 : vector<2x256xf32>
    %110 = arith.addf %105, %109 : vector<2x256xf32>
    %c29_i32 = arith.constant 29 : i32
    %111 = tpu.dynamic_rotate %44 by %c29_i32 dim 1 : vector<2x256xf32>, i32 -> vector<2x256xf32>
    %c13 = arith.constant 13 : index
    %c0_44 = arith.constant 0 : index
    %c0_45 = arith.constant 0 : index
    %112 = vector.load %arg4[%c13, %c0_44, %c0_45] : memref<49x2x256xf32, #tpu.memory_space<vmem>>, vector<1x2x256xf32>
    %113 = vector.shape_cast %112 : vector<1x2x256xf32> to vector<2x256xf32>
    %114 = arith.mulf %113, %111 : vector<2x256xf32>
    %115 = arith.addf %110, %114 : vector<2x256xf32>
    %c19_i32 = arith.constant 19 : i32
    %116 = tpu.dynamic_rotate %44 by %c19_i32 dim 1 : vector<2x256xf32>, i32 -> vector<2x256xf32>
    %c14 = arith.constant 14 : index
    %c0_46 = arith.constant 0 : index
    %c0_47 = arith.constant 0 : index
    %117 = vector.load %arg4[%c14, %c0_46, %c0_47] : memref<49x2x256xf32, #tpu.memory_space<vmem>>, vector<1x2x256xf32>
    %118 = vector.shape_cast %117 : vector<1x2x256xf32> to vector<2x256xf32>
    %119 = arith.mulf %118, %116 : vector<2x256xf32>
    %120 = arith.addf %115, %119 : vector<2x256xf32>
    %c18_i32 = arith.constant 18 : i32
    %121 = tpu.dynamic_rotate %44 by %c18_i32 dim 1 : vector<2x256xf32>, i32 -> vector<2x256xf32>
    %c15 = arith.constant 15 : index
    %c0_48 = arith.constant 0 : index
    %c0_49 = arith.constant 0 : index
    %122 = vector.load %arg4[%c15, %c0_48, %c0_49] : memref<49x2x256xf32, #tpu.memory_space<vmem>>, vector<1x2x256xf32>
    %123 = vector.shape_cast %122 : vector<1x2x256xf32> to vector<2x256xf32>
    %124 = arith.mulf %123, %121 : vector<2x256xf32>
    %125 = arith.addf %120, %124 : vector<2x256xf32>
    %c17_i32 = arith.constant 17 : i32
    %126 = tpu.dynamic_rotate %44 by %c17_i32 dim 1 : vector<2x256xf32>, i32 -> vector<2x256xf32>
    %c16 = arith.constant 16 : index
    %c0_50 = arith.constant 0 : index
    %c0_51 = arith.constant 0 : index
    %127 = vector.load %arg4[%c16, %c0_50, %c0_51] : memref<49x2x256xf32, #tpu.memory_space<vmem>>, vector<1x2x256xf32>
    %128 = vector.shape_cast %127 : vector<1x2x256xf32> to vector<2x256xf32>
    %129 = arith.mulf %128, %126 : vector<2x256xf32>
    %130 = arith.addf %125, %129 : vector<2x256xf32>
    %c16_i32 = arith.constant 16 : i32
    %131 = tpu.dynamic_rotate %44 by %c16_i32 dim 1 : vector<2x256xf32>, i32 -> vector<2x256xf32>
    %c17 = arith.constant 17 : index
    %c0_52 = arith.constant 0 : index
    %c0_53 = arith.constant 0 : index
    %132 = vector.load %arg4[%c17, %c0_52, %c0_53] : memref<49x2x256xf32, #tpu.memory_space<vmem>>, vector<1x2x256xf32>
    %133 = vector.shape_cast %132 : vector<1x2x256xf32> to vector<2x256xf32>
    %134 = arith.mulf %133, %131 : vector<2x256xf32>
    %135 = arith.addf %130, %134 : vector<2x256xf32>
    %c15_i32 = arith.constant 15 : i32
    %136 = tpu.dynamic_rotate %44 by %c15_i32 dim 1 : vector<2x256xf32>, i32 -> vector<2x256xf32>
    %c18 = arith.constant 18 : index
    %c0_54 = arith.constant 0 : index
    %c0_55 = arith.constant 0 : index
    %137 = vector.load %arg4[%c18, %c0_54, %c0_55] : memref<49x2x256xf32, #tpu.memory_space<vmem>>, vector<1x2x256xf32>
    %138 = vector.shape_cast %137 : vector<1x2x256xf32> to vector<2x256xf32>
    %139 = arith.mulf %138, %136 : vector<2x256xf32>
    %140 = arith.addf %135, %139 : vector<2x256xf32>
    %c14_i32 = arith.constant 14 : i32
    %141 = tpu.dynamic_rotate %44 by %c14_i32 dim 1 : vector<2x256xf32>, i32 -> vector<2x256xf32>
    %c19 = arith.constant 19 : index
    %c0_56 = arith.constant 0 : index
    %c0_57 = arith.constant 0 : index
    %142 = vector.load %arg4[%c19, %c0_56, %c0_57] : memref<49x2x256xf32, #tpu.memory_space<vmem>>, vector<1x2x256xf32>
    %143 = vector.shape_cast %142 : vector<1x2x256xf32> to vector<2x256xf32>
    %144 = arith.mulf %143, %141 : vector<2x256xf32>
    %145 = arith.addf %140, %144 : vector<2x256xf32>
    %c13_i32 = arith.constant 13 : i32
    %146 = tpu.dynamic_rotate %44 by %c13_i32 dim 1 : vector<2x256xf32>, i32 -> vector<2x256xf32>
    %c20 = arith.constant 20 : index
    %c0_58 = arith.constant 0 : index
    %c0_59 = arith.constant 0 : index
    %147 = vector.load %arg4[%c20, %c0_58, %c0_59] : memref<49x2x256xf32, #tpu.memory_space<vmem>>, vector<1x2x256xf32>
    %148 = vector.shape_cast %147 : vector<1x2x256xf32> to vector<2x256xf32>
    %149 = arith.mulf %148, %146 : vector<2x256xf32>
    %150 = arith.addf %145, %149 : vector<2x256xf32>
    %c3_i32 = arith.constant 3 : i32
    %151 = tpu.dynamic_rotate %44 by %c3_i32 dim 1 : vector<2x256xf32>, i32 -> vector<2x256xf32>
    %c21 = arith.constant 21 : index
    %c0_60 = arith.constant 0 : index
    %c0_61 = arith.constant 0 : index
    %152 = vector.load %arg4[%c21, %c0_60, %c0_61] : memref<49x2x256xf32, #tpu.memory_space<vmem>>, vector<1x2x256xf32>
    %153 = vector.shape_cast %152 : vector<1x2x256xf32> to vector<2x256xf32>
    %154 = arith.mulf %153, %151 : vector<2x256xf32>
    %155 = arith.addf %150, %154 : vector<2x256xf32>
    %c2_i32 = arith.constant 2 : i32
    %156 = tpu.dynamic_rotate %44 by %c2_i32 dim 1 : vector<2x256xf32>, i32 -> vector<2x256xf32>
    %c22 = arith.constant 22 : index
    %c0_62 = arith.constant 0 : index
    %c0_63 = arith.constant 0 : index
    %157 = vector.load %arg4[%c22, %c0_62, %c0_63] : memref<49x2x256xf32, #tpu.memory_space<vmem>>, vector<1x2x256xf32>
    %158 = vector.shape_cast %157 : vector<1x2x256xf32> to vector<2x256xf32>
    %159 = arith.mulf %158, %156 : vector<2x256xf32>
    %160 = arith.addf %155, %159 : vector<2x256xf32>
    %c1_i32 = arith.constant 1 : i32
    %161 = tpu.dynamic_rotate %44 by %c1_i32 dim 1 : vector<2x256xf32>, i32 -> vector<2x256xf32>
    %c23 = arith.constant 23 : index
    %c0_64 = arith.constant 0 : index
    %c0_65 = arith.constant 0 : index
    %162 = vector.load %arg4[%c23, %c0_64, %c0_65] : memref<49x2x256xf32, #tpu.memory_space<vmem>>, vector<1x2x256xf32>
    %163 = vector.shape_cast %162 : vector<1x2x256xf32> to vector<2x256xf32>
    %164 = arith.mulf %163, %161 : vector<2x256xf32>
    %165 = arith.addf %160, %164 : vector<2x256xf32>
    %c24 = arith.constant 24 : index
    %c0_66 = arith.constant 0 : index
    %c0_67 = arith.constant 0 : index
    %166 = vector.load %arg4[%c24, %c0_66, %c0_67] : memref<49x2x256xf32, #tpu.memory_space<vmem>>, vector<1x2x256xf32>
    %167 = vector.shape_cast %166 : vector<1x2x256xf32> to vector<2x256xf32>
    %168 = arith.mulf %167, %44 : vector<2x256xf32>
    %169 = arith.addf %165, %168 : vector<2x256xf32>
    %c255_i32 = arith.constant 255 : i32
    %170 = tpu.dynamic_rotate %44 by %c255_i32 dim 1 : vector<2x256xf32>, i32 -> vector<2x256xf32>
    %c25 = arith.constant 25 : index
    %c0_68 = arith.constant 0 : index
    %c0_69 = arith.constant 0 : index
    %171 = vector.load %arg4[%c25, %c0_68, %c0_69] : memref<49x2x256xf32, #tpu.memory_space<vmem>>, vector<1x2x256xf32>
    %172 = vector.shape_cast %171 : vector<1x2x256xf32> to vector<2x256xf32>
    %173 = arith.mulf %172, %170 : vector<2x256xf32>
    %174 = arith.addf %169, %173 : vector<2x256xf32>
    %c254_i32 = arith.constant 254 : i32
    %175 = tpu.dynamic_rotate %44 by %c254_i32 dim 1 : vector<2x256xf32>, i32 -> vector<2x256xf32>
    %c26 = arith.constant 26 : index
    %c0_70 = arith.constant 0 : index
    %c0_71 = arith.constant 0 : index
    %176 = vector.load %arg4[%c26, %c0_70, %c0_71] : memref<49x2x256xf32, #tpu.memory_space<vmem>>, vector<1x2x256xf32>
    %177 = vector.shape_cast %176 : vector<1x2x256xf32> to vector<2x256xf32>
    %178 = arith.mulf %177, %175 : vector<2x256xf32>
    %179 = arith.addf %174, %178 : vector<2x256xf32>
    %c253_i32 = arith.constant 253 : i32
    %180 = tpu.dynamic_rotate %44 by %c253_i32 dim 1 : vector<2x256xf32>, i32 -> vector<2x256xf32>
    %c27 = arith.constant 27 : index
    %c0_72 = arith.constant 0 : index
    %c0_73 = arith.constant 0 : index
    %181 = vector.load %arg4[%c27, %c0_72, %c0_73] : memref<49x2x256xf32, #tpu.memory_space<vmem>>, vector<1x2x256xf32>
    %182 = vector.shape_cast %181 : vector<1x2x256xf32> to vector<2x256xf32>
    %183 = arith.mulf %182, %180 : vector<2x256xf32>
    %184 = arith.addf %179, %183 : vector<2x256xf32>
    %c243_i32 = arith.constant 243 : i32
    %185 = tpu.dynamic_rotate %44 by %c243_i32 dim 1 : vector<2x256xf32>, i32 -> vector<2x256xf32>
    %c28 = arith.constant 28 : index
    %c0_74 = arith.constant 0 : index
    %c0_75 = arith.constant 0 : index
    %186 = vector.load %arg4[%c28, %c0_74, %c0_75] : memref<49x2x256xf32, #tpu.memory_space<vmem>>, vector<1x2x256xf32>
    %187 = vector.shape_cast %186 : vector<1x2x256xf32> to vector<2x256xf32>
    %188 = arith.mulf %187, %185 : vector<2x256xf32>
    %189 = arith.addf %184, %188 : vector<2x256xf32>
    %c242_i32 = arith.constant 242 : i32
    %190 = tpu.dynamic_rotate %44 by %c242_i32 dim 1 : vector<2x256xf32>, i32 -> vector<2x256xf32>
    %c29 = arith.constant 29 : index
    %c0_76 = arith.constant 0 : index
    %c0_77 = arith.constant 0 : index
    %191 = vector.load %arg4[%c29, %c0_76, %c0_77] : memref<49x2x256xf32, #tpu.memory_space<vmem>>, vector<1x2x256xf32>
    %192 = vector.shape_cast %191 : vector<1x2x256xf32> to vector<2x256xf32>
    %193 = arith.mulf %192, %190 : vector<2x256xf32>
    %194 = arith.addf %189, %193 : vector<2x256xf32>
    %c241_i32 = arith.constant 241 : i32
    %195 = tpu.dynamic_rotate %44 by %c241_i32 dim 1 : vector<2x256xf32>, i32 -> vector<2x256xf32>
    %c30 = arith.constant 30 : index
    %c0_78 = arith.constant 0 : index
    %c0_79 = arith.constant 0 : index
    %196 = vector.load %arg4[%c30, %c0_78, %c0_79] : memref<49x2x256xf32, #tpu.memory_space<vmem>>, vector<1x2x256xf32>
    %197 = vector.shape_cast %196 : vector<1x2x256xf32> to vector<2x256xf32>
    %198 = arith.mulf %197, %195 : vector<2x256xf32>
    %199 = arith.addf %194, %198 : vector<2x256xf32>
    %c240_i32 = arith.constant 240 : i32
    %200 = tpu.dynamic_rotate %44 by %c240_i32 dim 1 : vector<2x256xf32>, i32 -> vector<2x256xf32>
    %c31 = arith.constant 31 : index
    %c0_80 = arith.constant 0 : index
    %c0_81 = arith.constant 0 : index
    %201 = vector.load %arg4[%c31, %c0_80, %c0_81] : memref<49x2x256xf32, #tpu.memory_space<vmem>>, vector<1x2x256xf32>
    %202 = vector.shape_cast %201 : vector<1x2x256xf32> to vector<2x256xf32>
    %203 = arith.mulf %202, %200 : vector<2x256xf32>
    %204 = arith.addf %199, %203 : vector<2x256xf32>
    %c239_i32 = arith.constant 239 : i32
    %205 = tpu.dynamic_rotate %44 by %c239_i32 dim 1 : vector<2x256xf32>, i32 -> vector<2x256xf32>
    %c32 = arith.constant 32 : index
    %c0_82 = arith.constant 0 : index
    %c0_83 = arith.constant 0 : index
    %206 = vector.load %arg4[%c32, %c0_82, %c0_83] : memref<49x2x256xf32, #tpu.memory_space<vmem>>, vector<1x2x256xf32>
    %207 = vector.shape_cast %206 : vector<1x2x256xf32> to vector<2x256xf32>
    %208 = arith.mulf %207, %205 : vector<2x256xf32>
    %209 = arith.addf %204, %208 : vector<2x256xf32>
    %c238_i32 = arith.constant 238 : i32
    %210 = tpu.dynamic_rotate %44 by %c238_i32 dim 1 : vector<2x256xf32>, i32 -> vector<2x256xf32>
    %c33 = arith.constant 33 : index
    %c0_84 = arith.constant 0 : index
    %c0_85 = arith.constant 0 : index
    %211 = vector.load %arg4[%c33, %c0_84, %c0_85] : memref<49x2x256xf32, #tpu.memory_space<vmem>>, vector<1x2x256xf32>
    %212 = vector.shape_cast %211 : vector<1x2x256xf32> to vector<2x256xf32>
    %213 = arith.mulf %212, %210 : vector<2x256xf32>
    %214 = arith.addf %209, %213 : vector<2x256xf32>
    %c237_i32 = arith.constant 237 : i32
    %215 = tpu.dynamic_rotate %44 by %c237_i32 dim 1 : vector<2x256xf32>, i32 -> vector<2x256xf32>
    %c34 = arith.constant 34 : index
    %c0_86 = arith.constant 0 : index
    %c0_87 = arith.constant 0 : index
    %216 = vector.load %arg4[%c34, %c0_86, %c0_87] : memref<49x2x256xf32, #tpu.memory_space<vmem>>, vector<1x2x256xf32>
    %217 = vector.shape_cast %216 : vector<1x2x256xf32> to vector<2x256xf32>
    %218 = arith.mulf %217, %215 : vector<2x256xf32>
    %219 = arith.addf %214, %218 : vector<2x256xf32>
    %c227_i32 = arith.constant 227 : i32
    %220 = tpu.dynamic_rotate %44 by %c227_i32 dim 1 : vector<2x256xf32>, i32 -> vector<2x256xf32>
    %c35 = arith.constant 35 : index
    %c0_88 = arith.constant 0 : index
    %c0_89 = arith.constant 0 : index
    %221 = vector.load %arg4[%c35, %c0_88, %c0_89] : memref<49x2x256xf32, #tpu.memory_space<vmem>>, vector<1x2x256xf32>
    %222 = vector.shape_cast %221 : vector<1x2x256xf32> to vector<2x256xf32>
    %223 = arith.mulf %222, %220 : vector<2x256xf32>
    %224 = arith.addf %219, %223 : vector<2x256xf32>
    %c226_i32 = arith.constant 226 : i32
    %225 = tpu.dynamic_rotate %44 by %c226_i32 dim 1 : vector<2x256xf32>, i32 -> vector<2x256xf32>
    %c36 = arith.constant 36 : index
    %c0_90 = arith.constant 0 : index
    %c0_91 = arith.constant 0 : index
    %226 = vector.load %arg4[%c36, %c0_90, %c0_91] : memref<49x2x256xf32, #tpu.memory_space<vmem>>, vector<1x2x256xf32>
    %227 = vector.shape_cast %226 : vector<1x2x256xf32> to vector<2x256xf32>
    %228 = arith.mulf %227, %225 : vector<2x256xf32>
    %229 = arith.addf %224, %228 : vector<2x256xf32>
    %c225_i32 = arith.constant 225 : i32
    %230 = tpu.dynamic_rotate %44 by %c225_i32 dim 1 : vector<2x256xf32>, i32 -> vector<2x256xf32>
    %c37 = arith.constant 37 : index
    %c0_92 = arith.constant 0 : index
    %c0_93 = arith.constant 0 : index
    %231 = vector.load %arg4[%c37, %c0_92, %c0_93] : memref<49x2x256xf32, #tpu.memory_space<vmem>>, vector<1x2x256xf32>
    %232 = vector.shape_cast %231 : vector<1x2x256xf32> to vector<2x256xf32>
    %233 = arith.mulf %232, %230 : vector<2x256xf32>
    %234 = arith.addf %229, %233 : vector<2x256xf32>
    %c224_i32 = arith.constant 224 : i32
    %235 = tpu.dynamic_rotate %44 by %c224_i32 dim 1 : vector<2x256xf32>, i32 -> vector<2x256xf32>
    %c38 = arith.constant 38 : index
    %c0_94 = arith.constant 0 : index
    %c0_95 = arith.constant 0 : index
    %236 = vector.load %arg4[%c38, %c0_94, %c0_95] : memref<49x2x256xf32, #tpu.memory_space<vmem>>, vector<1x2x256xf32>
    %237 = vector.shape_cast %236 : vector<1x2x256xf32> to vector<2x256xf32>
    %238 = arith.mulf %237, %235 : vector<2x256xf32>
    %239 = arith.addf %234, %238 : vector<2x256xf32>
    %c223_i32 = arith.constant 223 : i32
    %240 = tpu.dynamic_rotate %44 by %c223_i32 dim 1 : vector<2x256xf32>, i32 -> vector<2x256xf32>
    %c39 = arith.constant 39 : index
    %c0_96 = arith.constant 0 : index
    %c0_97 = arith.constant 0 : index
    %241 = vector.load %arg4[%c39, %c0_96, %c0_97] : memref<49x2x256xf32, #tpu.memory_space<vmem>>, vector<1x2x256xf32>
    %242 = vector.shape_cast %241 : vector<1x2x256xf32> to vector<2x256xf32>
    %243 = arith.mulf %242, %240 : vector<2x256xf32>
    %244 = arith.addf %239, %243 : vector<2x256xf32>
    %c222_i32 = arith.constant 222 : i32
    %245 = tpu.dynamic_rotate %44 by %c222_i32 dim 1 : vector<2x256xf32>, i32 -> vector<2x256xf32>
    %c40 = arith.constant 40 : index
    %c0_98 = arith.constant 0 : index
    %c0_99 = arith.constant 0 : index
    %246 = vector.load %arg4[%c40, %c0_98, %c0_99] : memref<49x2x256xf32, #tpu.memory_space<vmem>>, vector<1x2x256xf32>
    %247 = vector.shape_cast %246 : vector<1x2x256xf32> to vector<2x256xf32>
    %248 = arith.mulf %247, %245 : vector<2x256xf32>
    %249 = arith.addf %244, %248 : vector<2x256xf32>
    %c221_i32 = arith.constant 221 : i32
    %250 = tpu.dynamic_rotate %44 by %c221_i32 dim 1 : vector<2x256xf32>, i32 -> vector<2x256xf32>
    %c41 = arith.constant 41 : index
    %c0_100 = arith.constant 0 : index
    %c0_101 = arith.constant 0 : index
    %251 = vector.load %arg4[%c41, %c0_100, %c0_101] : memref<49x2x256xf32, #tpu.memory_space<vmem>>, vector<1x2x256xf32>
    %252 = vector.shape_cast %251 : vector<1x2x256xf32> to vector<2x256xf32>
    %253 = arith.mulf %252, %250 : vector<2x256xf32>
    %254 = arith.addf %249, %253 : vector<2x256xf32>
    %c211_i32 = arith.constant 211 : i32
    %255 = tpu.dynamic_rotate %44 by %c211_i32 dim 1 : vector<2x256xf32>, i32 -> vector<2x256xf32>
    %c42 = arith.constant 42 : index
    %c0_102 = arith.constant 0 : index
    %c0_103 = arith.constant 0 : index
    %256 = vector.load %arg4[%c42, %c0_102, %c0_103] : memref<49x2x256xf32, #tpu.memory_space<vmem>>, vector<1x2x256xf32>
    %257 = vector.shape_cast %256 : vector<1x2x256xf32> to vector<2x256xf32>
    %258 = arith.mulf %257, %255 : vector<2x256xf32>
    %259 = arith.addf %254, %258 : vector<2x256xf32>
    %c210_i32 = arith.constant 210 : i32
    %260 = tpu.dynamic_rotate %44 by %c210_i32 dim 1 : vector<2x256xf32>, i32 -> vector<2x256xf32>
    %c43 = arith.constant 43 : index
    %c0_104 = arith.constant 0 : index
    %c0_105 = arith.constant 0 : index
    %261 = vector.load %arg4[%c43, %c0_104, %c0_105] : memref<49x2x256xf32, #tpu.memory_space<vmem>>, vector<1x2x256xf32>
    %262 = vector.shape_cast %261 : vector<1x2x256xf32> to vector<2x256xf32>
    %263 = arith.mulf %262, %260 : vector<2x256xf32>
    %264 = arith.addf %259, %263 : vector<2x256xf32>
    %c209_i32 = arith.constant 209 : i32
    %265 = tpu.dynamic_rotate %44 by %c209_i32 dim 1 : vector<2x256xf32>, i32 -> vector<2x256xf32>
    %c44 = arith.constant 44 : index
    %c0_106 = arith.constant 0 : index
    %c0_107 = arith.constant 0 : index
    %266 = vector.load %arg4[%c44, %c0_106, %c0_107] : memref<49x2x256xf32, #tpu.memory_space<vmem>>, vector<1x2x256xf32>
    %267 = vector.shape_cast %266 : vector<1x2x256xf32> to vector<2x256xf32>
    %268 = arith.mulf %267, %265 : vector<2x256xf32>
    %269 = arith.addf %264, %268 : vector<2x256xf32>
    %c208_i32 = arith.constant 208 : i32
    %270 = tpu.dynamic_rotate %44 by %c208_i32 dim 1 : vector<2x256xf32>, i32 -> vector<2x256xf32>
    %c45 = arith.constant 45 : index
    %c0_108 = arith.constant 0 : index
    %c0_109 = arith.constant 0 : index
    %271 = vector.load %arg4[%c45, %c0_108, %c0_109] : memref<49x2x256xf32, #tpu.memory_space<vmem>>, vector<1x2x256xf32>
    %272 = vector.shape_cast %271 : vector<1x2x256xf32> to vector<2x256xf32>
    %273 = arith.mulf %272, %270 : vector<2x256xf32>
    %274 = arith.addf %269, %273 : vector<2x256xf32>
    %c207_i32 = arith.constant 207 : i32
    %275 = tpu.dynamic_rotate %44 by %c207_i32 dim 1 : vector<2x256xf32>, i32 -> vector<2x256xf32>
    %c46 = arith.constant 46 : index
    %c0_110 = arith.constant 0 : index
    %c0_111 = arith.constant 0 : index
    %276 = vector.load %arg4[%c46, %c0_110, %c0_111] : memref<49x2x256xf32, #tpu.memory_space<vmem>>, vector<1x2x256xf32>
    %277 = vector.shape_cast %276 : vector<1x2x256xf32> to vector<2x256xf32>
    %278 = arith.mulf %277, %275 : vector<2x256xf32>
    %279 = arith.addf %274, %278 : vector<2x256xf32>
    %c206_i32 = arith.constant 206 : i32
    %280 = tpu.dynamic_rotate %44 by %c206_i32 dim 1 : vector<2x256xf32>, i32 -> vector<2x256xf32>
    %c47 = arith.constant 47 : index
    %c0_112 = arith.constant 0 : index
    %c0_113 = arith.constant 0 : index
    %281 = vector.load %arg4[%c47, %c0_112, %c0_113] : memref<49x2x256xf32, #tpu.memory_space<vmem>>, vector<1x2x256xf32>
    %282 = vector.shape_cast %281 : vector<1x2x256xf32> to vector<2x256xf32>
    %283 = arith.mulf %282, %280 : vector<2x256xf32>
    %284 = arith.addf %279, %283 : vector<2x256xf32>
    %c205_i32 = arith.constant 205 : i32
    %285 = tpu.dynamic_rotate %44 by %c205_i32 dim 1 : vector<2x256xf32>, i32 -> vector<2x256xf32>
    %c48 = arith.constant 48 : index
    %c0_114 = arith.constant 0 : index
    %c0_115 = arith.constant 0 : index
    %286 = vector.load %arg4[%c48, %c0_114, %c0_115] : memref<49x2x256xf32, #tpu.memory_space<vmem>>, vector<1x2x256xf32>
    %287 = vector.shape_cast %286 : vector<1x2x256xf32> to vector<2x256xf32>
    %288 = arith.mulf %287, %285 : vector<2x256xf32>
    %289 = arith.addf %284, %288 : vector<2x256xf32>
    %290 = vector.extract_strided_slice %289 {offsets = [0, 0], sizes = [1, 256], strides = [1, 1]} : vector<2x256xf32> to vector<1x256xf32>
    %291 = vector.extract_strided_slice %289 {offsets = [1, 0], sizes = [1, 256], strides = [1, 1]} : vector<2x256xf32> to vector<1x256xf32>
    %292 = arith.addf %290, %291 : vector<1x256xf32>
    %cst_116 = arith.constant 0.000000e+00 : f32
    %293 = vector.broadcast %cst_116 : f32 to vector<1x256xf32>
    %294 = arith.subf %293, %292 : vector<1x256xf32>
    %295 = math.exp %294 : vector<1x256xf32>
    %cst_117 = arith.constant 1.000000e+00 : f32
    %296 = vector.broadcast %cst_117 : f32 to vector<1x256xf32>
    %297 = arith.addf %296, %295 : vector<1x256xf32>
    %cst_118 = arith.constant 1.000000e+00 : f32
    %298 = vector.broadcast %cst_118 : f32 to vector<1x256xf32>
    %299 = arith.divf %298, %297 : vector<1x256xf32>
    %300 = vector.broadcast %299 : vector<1x256xf32> to vector<4x256xf32>
    %301 = arith.mulf %30, %300 : vector<4x256xf32>
    %c0_119 = arith.constant 0 : index
    %c0_120 = arith.constant 0 : index
    %c0_121 = arith.constant 0 : index
    %302 = vector.load %arg5[%c0_119, %c0_120, %c0_121] : memref<1x4x256xf32, #tpu.memory_space<vmem>>, vector<1x4x256xf32>
    %303 = vector.shape_cast %302 : vector<1x4x256xf32> to vector<4x256xf32>
    %304 = vector.shape_cast %301 : vector<4x256xf32> to vector<1x4x256xf32>
    tpu.vector_store %arg5[%c0_119, %c0_120, %c0_121], %304 {strides = array<i32>} : memref<1x4x256xf32, #tpu.memory_space<vmem>>, vector<1x4x256xf32>,
    return
  }
  func.func @transform_0(%arg0: i32) -> (i32, i32, i32) {
    %c0_i32 = arith.constant 0 : i32
    %c0_i32_0 = arith.constant 0 : i32
    %c0_i32_1 = arith.constant 0 : i32
    return %arg0, %c0_i32, %c0_i32_0 : i32, i32, i32
  }
  func.func @transform_1(%arg0: i32) -> (i32, i32) {
    %c0_i32 = arith.constant 0 : i32
    %c0_i32_0 = arith.constant 0 : i32
    %c0_i32_1 = arith.constant 0 : i32
    return %c0_i32, %c0_i32_0 : i32, i32
  }
  func.func @transform_2(%arg0: i32) -> (i32, i32) {
    %c0_i32 = arith.constant 0 : i32
    %c0_i32_0 = arith.constant 0 : i32
    %c0_i32_1 = arith.constant 0 : i32
    return %c0_i32, %c0_i32_0 : i32, i32
  }
  func.func @transform_3(%arg0: i32) -> (i32, i32, i32) {
    %c0_i32 = arith.constant 0 : i32
    %c0_i32_0 = arith.constant 0 : i32
    %c0_i32_1 = arith.constant 0 : i32
    %c0_i32_2 = arith.constant 0 : i32
    return %c0_i32, %c0_i32_0, %c0_i32_1 : i32, i32, i32
  }
  func.func @transform_4(%arg0: i32) -> (i32, i32, i32) {
    %c0_i32 = arith.constant 0 : i32
    %c0_i32_0 = arith.constant 0 : i32
    %c0_i32_1 = arith.constant 0 : i32
    return %arg0, %c0_i32, %c0_i32_0 : i32, i32, i32
  }
}

</mosaic_0001>

<bundles_post_ra>
// kernel: tpu_custom_call.1
= control target key start
LH: loop header
LB: loop body
LE: loop exit
PB: predicated region body
PF: predicated region fallthrough
CT: control target
= control target key end

     0   :  { %9 = vsyncpa [#allocation3], 0  ;;  %s2677_s0 = inlined_call_operand.hbm [shape: f32[2,4,256], index: 0, kind: input, shape index: {}]   ;;  %s2678_s1 = inlined_call_operand.vmem [shape: f32[4,4], index: 1, kind: input, shape index: {}]   ;;  %s2679_s2 = inlined_call_operand.vmem [shape: f32[4,1], index: 2, kind: input, shape index: {}]   ;;  %s2680_s3 = inlined_call_operand.hbm [shape: f32[49,2,256], index: 3, kind: input, shape index: {}]   ;;  %s2681_s4 = inlined_call_operand.hbm [shape: f32[2,4,256], index: 4, kind: output, shape index: {}]  }
   0x1   :  { %11 = vsyncpa [#allocation3 + $0x1], 0 }
   0x2   :  { %12 = vsyncpa [#allocation6], 0 }
   0x3   :  { %13 = vsyncpa [#allocation4], 0 }
   0x4   :  { %15 = vsyncpa [#allocation4 + $0x1], 0  ;;  %s1869_s15 = smov 0   ;;  %s1871_s16 = smov 0  }
   0x5   :  { %s1873_s17 = smov 0   ;;  %s1875_s18 = smov 0  }
   0x6 LB: > { %s1890_s19 = sadd.s32 4294967295, %s1786_s18   ;;  %s1518_s20 = sadd.s32 4294967294, %s1786_s18   ;;  %s1786_s18 = sphi %s1875_s18, %s2708_s18   ;;  %s1782_s17 = sphi %s1873_s17, %s2707_s17   ;;  %s1778_s16 = sphi %s1871_s16, %s2706_s16   ;;  %s1774_s15 = sphi %s1869_s15, %s2705_s15  }
   0x7   : > { %p41_p0 = scmp.ne.s32.totalorder %s1778_s16, %s1774_s15  ;;  %p2682_p1 = scmp.eq.s32.totalorder %s1890_s19, 0 }
   0x8   : > { %p134_p3 = scmp.eq.s32.totalorder %s1518_s20, 1  ;;  %p1519_p5 = scmp.ge.s32.totalorder %s1786_s18, 1 }
   0x9   : > { %p1899_p4 = por %p2682_p1, %p41_p0  ;;  %p141_p7 = scmp.lt.s32.totalorder %s1786_s18, 3 }
   0xa   : > { %p1904_p6 = por %p134_p3, %p41_p0  ;;  %s1788_s24 = smov [#allocation5]  }
   0xb   : > { %s2685_s21 = scalar_select %p1899_p4, 1, 0 }
   0xc   : > { %s2686_s22 = scalar_select %p1904_p6, 1, 0 }
   0xd   : > { %p1909_p8 = pnand %p1519_p5, %p141_p7  ;;  %s159_s25 = sshll.u32 %s1788_s24, 4  ;;  %s1913_s25 = int_to_ptr.vmem [resolvable:$true] %s159_s25 }
   0xe   : > { %s1925_s27 = sadd.s32 1, %s1786_s18   ;;  %s28_s28 = sadd.s32 1, %s1782_s17 }
   0xf   : > { %s2687_s23 = scalar_select %p1909_p8, 1, 0 }
  0x10   : > { %p1545_p9 = pneg %p1909_p8  ;;  %s25_s29 = ssub.s32 %s1786_s18, %s1925_s27 }
  0x11   : > { %s1658_s6 = scalar_lea.hbm %s2680_s3, 3136 }
  0x12   : > { %p1920_p11 = pnand %p1545_p9, %p2682_p1  ;;  %p1659_p12 = scmp.ne.s32.totalorder %s2680_s3, %s1658_s6 }
  0x13   : > { %p1665_p5 = scmp.lt.u32.totalorder %s1658_s6, %s2680_s3 }
  0x14   : > { %p1660_p13 = pneg %p1920_p11 }
  0x16   : > { %p1661_p0 = pnand %p1660_p13, %p1659_p12 }
  0x18   : > { %p1662_p3 = pneg %p1661_p0 }
  0x1a   : > { %p1667_p7 = pnand %p1665_p5, %p1662_p3 }
  0x1c   : > { %1670 = shalt.err (!%p1667_p7)
}
  0x1d   : > { %s1671_s11 = scalar_lea.vmem %s1913_s25, 3136  ;;  %p1679_p2 = scmp.lt.s32.totalorder %s1913_s25, %s1913_s25 }
  0x1e   : > { %p1672_p9 = scmp.ne.s32.totalorder %s1913_s25, %s1671_s11  ;;  %p1680_p6 = scmp.lt.s32.totalorder %s1671_s11, %s1671_s11 }
  0x20   : > { %p1674_p10 = pnand %p1672_p9, %p1660_p13  ;;  %p1681_p4 = por %p1680_p6, %p1679_p2 }
  0x22   : > { %p1675_p1 = pneg %p1674_p10 }
  0x24   : > { %p1682_p8 = pnand %p1681_p4, %p1675_p1 }
  0x26   : > { %1685 = shalt.err (!%p1682_p8)
}
  0x27   : > { %s1789_s12 = smov 64   ;;  %s1790_s13 = smov 4  }
  0x28   : > { %1548 = dma.hbm_to_vmem [thread:$0]  (!%p1920_p11), %s2680_s3, 3136, %s1913_s25, [#allocation6], %s1789_s12, %s1789_s12, %s1790_s13  }
  0x29   : > { %p26_p2 = scmp.eq.s32.totalorder %s25_s29, 0  ;;  %p35_p1 = scmp.ne.s32.totalorder %s1782_s17, %s1778_s16 }
  0x2a   : > { %p36_p4 = scmp.eq.s32.totalorder %s1786_s18, 0  ;;  %p1558_p6 = scmp.lt.s32.totalorder %s1786_s18, 2 }
  0x2b   : > { %s1956_s24 = scalar_select %p26_p2, %s1782_s17, %s28_s28  }
  0x2c   : > { %p37_p8 = por %p36_p4, %p35_p1  ;;  %p2689_p10 = scmp.eq.s32.totalorder %s1890_s19, 1 }
  0x2d   : > { %s173_s5 = sand.u32 1, %s1782_s17   ;;  %s1535_s6 = sshll.u32 %s1786_s18, 7 }
  0x2e   : > { %p1960_p12 = por %p2689_p10, %p35_p1  ;;  %s1522_s7 = sshll.u32 %s173_s5, 3 }
  0x2f   : > { %s1969_s9 = scalar_lea.hbm %s2677_s0, %s1535_s6  ;;  %s177_s25 = scalar_lea.vmem [#allocation2], %s1522_s7 }
  0x30   : > { %s185_s28 = sshll.u32 %s177_s25, 4  ;;  %p1971_p11 = pnand %p1558_p6, %p37_p8  ;;  %s1975_s28 = int_to_ptr.vmem [resolvable:$true] %s185_s28 }
  0x31   : > { %s174_s10 = scalar_lea.sflag [#allocation3], %s173_s5  ;;  %s1686_s11 = scalar_lea.hbm %s1969_s9, 128 }
  0x32   : > { %p1687_p13 = scmp.ne.s32.totalorder %s1969_s9, %s1686_s11  ;;  %p1688_p0 = pneg %p1971_p11 }
  0x33   : > { %s1691_s14 = scalar_lea.hbm %s2677_s0, 256  ;;  %p1692_p7 = scmp.lt.u32.totalorder %s1969_s9, %s2677_s0 }
  0x34   : > { %p1689_p3 = pnand %p1688_p0, %p1687_p13  ;;  %p1693_p9 = scmp.lt.u32.totalorder %s1691_s14, %s1686_s11 }
  0x35   : > { %p1695_p1 = scmp.lt.u32.totalorder %s1686_s11, %s1969_s9 }
  0x36   : > { %p1690_p5 = pneg %p1689_p3  ;;  %p1694_p2 = por %p1693_p9, %p1692_p7 }
  0x38   : > { %p1696_p4 = por %p1695_p1, %p1694_p2 }
  0x3a   : > { %p1697_p6 = pnand %p1696_p4, %p1690_p5 }
  0x3c   : > { %1700 = shalt.err (!%p1697_p6)
}
  0x3d   : > { %s1701_s5 = scalar_lea.vmem %s1975_s28, 128  ;;  %s1791_s7 = smov [#allocation2]  }
  0x3e   : > { %p1702_p8 = scmp.ne.s32.totalorder %s1975_s28, %s1701_s5  ;;  %s1706_s26 = sshll.u32 %s1791_s7, 4  ;;  %s1707_s26 = int_to_ptr.vmem [resolvable:$false] %s1706_s26 }
  0x3f   : > { %s1708_s8 = scalar_lea.vmem %s1707_s26, 256  ;;  %p1709_p3 = scmp.lt.s32.totalorder %s1975_s28, %s1707_s26 }
  0x40   : > { %p1704_p10 = pnand %p1702_p8, %p1688_p0  ;;  %p1710_p7 = scmp.lt.s32.totalorder %s1708_s8, %s1701_s5 }
  0x42   : > { %p1705_p13 = pneg %p1704_p10  ;;  %p1711_p9 = por %p1710_p7, %p1709_p3 }
  0x44   : > { %p1712_p2 = pnand %p1711_p9, %p1705_p13 }
  0x46   : > { %1715 = shalt.err (!%p1712_p2)
}
  0x47   : > { %1552 = dma.hbm_to_vmem [thread:$0]  (!%p1971_p11), %s1969_s9, 128, %s1975_s28, %s174_s10  }
  0x48   : > { %p2692_p5 = scmp.ne.s32.totalorder %s2687_s23, 0 }
  0x49   : > { %s2005_s25 = sand.u32 (!%p2692_p5), 1, %s1778_s16   ;;  %p2693_p0 = scmp.ne.s32.totalorder (!%p2692_p5), %s2685_s21, 0 }
  0x4a   : > { %194 = sbr.rel (%p2692_p5) target bundleno = 950 (0x3b6), region = 36  ;;  %s1526_s11 = sshll.u32 (!%p2692_p5), %s2005_s25, 3 }
  0x4b   : > { %s197_s12 = scalar_lea.sflag (!%p2692_p5), [#allocation3], %s2005_s25  ;;  %s200_s13 = scalar_lea.vmem (!%p2692_p5), [#allocation2], %s1526_s11 }
  0x51   : > { %1761 = dma.done.wait (%p2693_p0), %s197_s12, 128  }
  0x52   : > { %1763 = vsyncadd (%p2693_p0), %s197_s12, 4294967168  ;;  %p2694_p11 = scmp.eq.s32.totalorder %s1890_s19, 0 }
  0x54   : > { %1765 = dma.done.wait (%p2694_p11), [#allocation6], 3136   ;;  %p2695_p1 = pmov %p2694_p11 }
  0x55   : > { %vm233_vm0 = vcmask 1043456   ;;  %v229_v0 = vld [vmem:[%s200_s13] sm:$0xff]  ;;  %v240_v5 = vlaneseq  ;;  %vm246_vm2 = vcmask 27648   ;;  %v1792_v21 = vmov 0   ;;  %s1794_s29 = smov 47   ;;  %s1795_s10 = smov 51  }
  0x56   : > { %1767 = vsyncadd (%p2695_p1), [#allocation6], 4294964160  ;;  %v231_v1 = vcombine.high %v229_v0, %v229_v0  ;;  %v234_v2 = vsel %vm233_vm0, %v229_v0, 0.0  ;;  %v254_v17 = vld [vmem:[%s2678_s1] sm:$0xf]  ;;  %1647 = vset.pattern.permute.xlu1 %v1792_v21  ;;  %1648 = vset.pattern.permute.xlu0 %v1792_v21  ;;  %s1796_s14 = smov 46  }
  0x57   : > { %v2021_v6 = vshrl.u32 %v240_v5, 7  ;;  %v2023_v7 = vand.u32 127, %v240_v5  ;;  %v259_v22 = vld [vmem:[%s2679_s2] sm:$0xf]  ;;  %v1793_v30 = vmov 839922192  }
  0x58   : > { %v235_v3 = vsel %vm233_vm0, %v231_v1, 0.0  ;;  %v272_v31 = vunpack.c.l.s4 %v1793_v30  ;;  %s1797_s20 = smov 50   ;;  %s1798_s6 = smov 45  }
  0x59   : > { %v236_v4 = vadd.f32 %v235_v3, %v234_v2  ;;  %vm244_vm1 = vcmp.eq.s32.totalorder %v2021_v6, %v2023_v7  ;;  %vm314_vm3 = vcmp.eq.s32.totalorder %v2021_v6, 0  ;;  %s1799_s5 = smov 49   ;;  %s1800_s7 = smov 35   ;;  %vm364_vm4 = vcmp.lt.s32.totalorder %v2023_v7, 49 }
  0x5a   : > { %v273_v32 = vunpack.c.0.s8 %v272_v31  ;;  %s1801_s26 = smov 48   ;;  %s1802_s8 = smov 34   ;;  %vm386_vm5 = vcmp.lt.s32.totalorder %v2023_v7, 48  ;;  %vm408_vm6 = vcmp.lt.s32.totalorder %v2023_v7, 47  ;;  %vm430_vm7 = vcmp.lt.s32.totalorder %v2023_v7, 46 }
  0x5b   : > { %237 = vadd.xlane.f32.xlu0 %v236_v4  ;;  %s1803_s12 = smov 33   ;;  %s1804_s13 = smov 32   ;;  %vm452_vm8 = vcmp.lt.s32.totalorder %v2023_v7, 45  ;;  %vm474_vm9 = vcmp.lt.s32.totalorder %v2023_v7, 35  ;;  %vm496_vm10 = vcmp.lt.s32.totalorder %v2023_v7, 34  ;;  %vm518_vm11 = vcmp.lt.s32.totalorder %v2023_v7, 33 }
  0x5c   : > { %v276_v33 = vsub.s32 %v273_v32, %v2021_v6  ;;  %s1805_s21 = smov 31   ;;  %s1806_s23 = smov 30   ;;  %vm540_vm12 = vcmp.lt.s32.totalorder %v2023_v7, 32  ;;  %vm562_vm13 = vcmp.lt.s32.totalorder %v2023_v7, 31  ;;  %vm584_vm14 = vcmp.lt.s32.totalorder %v2023_v7, 30 }
  0x5d   : > { %s1807_s9 = smov 29   ;;  %s1808_s28 = smov 19   ;;  %vm606_vm15 = vcmp.lt.s32.totalorder %v2023_v7, 29 }
  0xe8   : > { %v238_v8 = vpop.xlane.xlu0 %237 }
  0xe9   : > { %v239_v9 = vmul.f32 0.00390625, %v238_v8 }
  0xeb   : > { %v245_v10 = vsel %vm244_vm1, %v239_v9, 0.0  ;;  %vm342_vm1 = vcmp.lt.s32.totalorder %v2023_v7, 50 }
  0xec   : > { %v247_v11 = vsel %vm246_vm2, %v245_v10, 0.0 }
  0xed   : > { %v248_v12 = vrot.slane %v247_v11, 4 }
  0xef   : > { %v249_v13 = vadd.f32 %v248_v12, %v247_v11 }
  0xf1   : > { %v250_v14 = vrot.slane %v249_v13, 2 }
  0xf3   : > { %v251_v15 = vadd.f32 %v250_v14, %v249_v13 }
  0xf5   : > { %v252_v16 = vrot.slane %v251_v15, 1 }
  0xf7   : > { %v253_v18 = vadd.f32 %v252_v16, %v251_v15 }
  0xf9   : > { %v255_v19 = vmul.f32 %v254_v17, %v253_v18 }
  0xfb   : > { %v256_v20 = vsel %vm246_vm2, %v255_v19, 0.0  ;;  %vm321_vm2 = vcmp.lt.s32.totalorder %v2023_v7, 51 }
  0xfc   : > { %257 = vadd.xlane.f32.xlu0 %v256_v20 }
 0x189   : > { %v258_v23 = vpop.xlane.xlu0 %257 }
 0x18a   : > { %v260_v24 = vadd.f32 %v259_v22, %v258_v23 }
 0x18c   : > { %v261_v25 = vsub.f32 0.0, %v260_v24 }
 0x18e   : > { %v262_v26 = vmul.f32 1.442695, %v261_v25 }
 0x190   : > { %1650 = vpow2.f32 %v262_v26 }
 0x19a   : > { %v1651_v27 = vpop.eup %1650 }
 0x19b   : > { %v264_v28 = vadd.f32 1.0, %v1651_v27 }
 0x19d   : > { %1652 = vrcp.f32 %v264_v28 }
 0x1a7   : > { %v1653_v29 = vpop.eup %1652 }
 0x1a8   : > { %269 = vperm.xlu1 %1647, %v1653_v29  }
 0x227   : > { %v270_v34 = vpop.permute.xlu1 %269 }
 0x228   : > { %v277_v35 = vrot.slane %v270_v34, %v276_v33 }
 0x22a   : > { %v2034_v36 = vmul.f32 %v277_v35, %v229_v0 }
 0x22c   : > { %v281_v37 = vcombine.high %v2034_v36, %v2034_v36  ;;  %v283_v38 = vsel %vm233_vm0, %v2034_v36, 0.0  ;;  %v300_v39 = vsel %vm233_vm0, %v2034_v36, -inf }
 0x22d   : > { %v284_v40 = vrot.slane %v283_v38, 4  ;;  %v301_v41 = vrot.slane %v300_v39, 4 }
 0x22e   : > { %v290_v42 = vsel %vm233_vm0, %v281_v37, 0.0  ;;  %v307_v48 = vsel %vm233_vm0, %v281_v37, -inf  ;;  %vm628_vm0 = vcmp.lt.s32.totalorder %v2023_v7, 19 }
 0x22f   : > { %v285_v43 = vadd.f32 %v284_v40, %v283_v38  ;;  %v291_v44 = vrot.slane %v290_v42, 4  ;;  %v302_v45 = vmax.f32 %v300_v39, %v301_v41  ;;  %v308_v54 = vrot.slane %v307_v48, 4 }
 0x231   : > { %v286_v46 = vrot.slane %v285_v43, 2  ;;  %v303_v47 = vrot.slane %v302_v45, 2  ;;  %v292_v50 = vadd.f32 %v291_v44, %v290_v42  ;;  %v309_v59 = vmax.f32 %v307_v48, %v308_v54 }
 0x233   : > { %v287_v49 = vadd.f32 %v286_v46, %v285_v43  ;;  %v304_v51 = vmax.f32 %v302_v45, %v303_v47  ;;  %v293_v56 = vrot.slane %v292_v50, 2  ;;  %v310_v62 = vrot.slane %v309_v59, 2 }
 0x235   : > { %v288_v52 = vrot.slane %v287_v49, 1  ;;  %v305_v53 = vrot.slane %v304_v51, 1  ;;  %v294_v60 = vadd.f32 %v293_v56, %v292_v50  ;;  %v311_v0 = vmax.f32 %v309_v59, %v310_v62 }
 0x237   : > { %v289_v55 = vadd.f32 %v288_v52, %v287_v49  ;;  %v306_v58 = vmax.f32 %v304_v51, %v305_v53  ;;  %v295_v63 = vrot.slane %v294_v60, 1  ;;  %v312_v2 = vrot.slane %v311_v0, 1 }
 0x239   : > { %v298_v57 = vmul.f32 0.25, %v289_v55  ;;  %v296_v1 = vadd.f32 %v295_v63, %v294_v60  ;;  %v313_v4 = vmax.f32 %v311_v0, %v312_v2 }
 0x23b   : > { %v2047_v61 = vsel %vm314_vm3, %v298_v57, %v306_v58  ;;  %v299_v3 = vmul.f32 0.25, %v296_v1 }
 0x23c   : > { %404 = vrot.lane.b32.xlu0 %v2047_v61, %s1794_s29  ;;  %317 = vrot.lane.b32.xlu1 %v2047_v61, %s1795_s10 }
 0x23d   : > { %v2062_v5 = vsel %vm314_vm3, %v299_v3, %v313_v4  ;;  %vm650_vm3 = vcmp.lt.s32.totalorder %v2023_v7, 18 }
 0x240   : > { %426 = vrot.lane.b32.xlu0 %v2047_v61, %s1796_s14  ;;  %338 = vrot.lane.b32.xlu1 %v2047_v61, %s1797_s20 }
 0x244   : > { %448 = vrot.lane.b32.xlu0 %v2047_v61, %s1798_s6  ;;  %360 = vrot.lane.b32.xlu1 %v2047_v61, %s1799_s5 }
 0x248   : > { %470 = vrot.lane.b32.xlu0 %v2047_v61, %s1800_s7  ;;  %382 = vrot.lane.b32.xlu1 %v2047_v61, %s1801_s26 }
 0x24c   : > { %492 = vrot.lane.b32.xlu0 %v2047_v61, %s1802_s8  ;;  %340 = vrot.lane.b32.xlu1 %v2062_v5, %s1797_s20  ;;  %s1809_s20 = smov 18  }
 0x250   : > { %514 = vrot.lane.b32.xlu0 %v2047_v61, %s1803_s12  ;;  %362 = vrot.lane.b32.xlu1 %v2062_v5, %s1799_s5  ;;  %s1813_s5 = smov 14  }
 0x254   : > { %536 = vrot.lane.b32.xlu0 %v2047_v61, %s1804_s13  ;;  %384 = vrot.lane.b32.xlu1 %v2062_v5, %s1801_s26  ;;  %s1815_s26 = smov 3  }
 0x258   : > { %558 = vrot.lane.b32.xlu0 %v2047_v61, %s1805_s21  ;;  %406 = vrot.lane.b32.xlu1 %v2062_v5, %s1794_s29  ;;  %s1810_s29 = smov 17  }
 0x25c   : > { %580 = vrot.lane.b32.xlu0 %v2047_v61, %s1806_s23  ;;  %428 = vrot.lane.b32.xlu1 %v2062_v5, %s1796_s14  ;;  %s1811_s14 = smov 16  }
 0x260   : > { %602 = vrot.lane.b32.xlu0 %v2047_v61, %s1807_s9  ;;  %450 = vrot.lane.b32.xlu1 %v2062_v5, %s1798_s6  ;;  %s1812_s6 = smov 15  }
 0x264   : > { %624 = vrot.lane.b32.xlu0 %v2047_v61, %s1808_s28  ;;  %472 = vrot.lane.b32.xlu1 %v2062_v5, %s1800_s7  ;;  %s1814_s7 = smov 13  }
 0x268   : > { %646 = vrot.lane.b32.xlu0 %v2047_v61, %s1809_s20  ;;  %494 = vrot.lane.b32.xlu1 %v2062_v5, %s1802_s8  ;;  %s1816_s8 = smov 2  }
 0x26c   : > { %668 = vrot.lane.b32.xlu0 %v2047_v61, %s1810_s29  ;;  %516 = vrot.lane.b32.xlu1 %v2062_v5, %s1803_s12  ;;  %s1817_s12 = smov 1  }
 0x270   : > { %690 = vrot.lane.b32.xlu0 %v2047_v61, %s1811_s14  ;;  %538 = vrot.lane.b32.xlu1 %v2062_v5, %s1804_s13  ;;  %s1818_s13 = smov 127  }
 0x274   : > { %712 = vrot.lane.b32.xlu0 %v2047_v61, %s1812_s6  ;;  %560 = vrot.lane.b32.xlu1 %v2062_v5, %s1805_s21  ;;  %s1819_s21 = smov 126  }
 0x278   : > { %734 = vrot.lane.b32.xlu0 %v2047_v61, %s1813_s5  ;;  %582 = vrot.lane.b32.xlu1 %v2062_v5, %s1806_s23  ;;  %s1820_s23 = smov 125  }
 0x27c   : > { %756 = vrot.lane.b32.xlu0 %v2047_v61, %s1814_s7  ;;  %604 = vrot.lane.b32.xlu1 %v2062_v5, %s1807_s9  ;;  %s1821_s9 = smov 115  }
 0x280   : > { %778 = vrot.lane.b32.xlu0 %v2047_v61, %s1815_s26  ;;  %626 = vrot.lane.b32.xlu1 %v2062_v5, %s1808_s28  ;;  %s1823_s28 = smov 113  }
 0x284   : > { %800 = vrot.lane.b32.xlu0 %v2047_v61, %s1816_s8  ;;  %648 = vrot.lane.b32.xlu1 %v2062_v5, %s1809_s20  ;;  %s1824_s20 = smov 112  }
 0x288   : > { %822 = vrot.lane.b32.xlu0 %v2047_v61, %s1817_s12  ;;  %670 = vrot.lane.b32.xlu1 %v2062_v5, %s1810_s29  ;;  %s1825_s29 = smov 111  }
 0x28c   : > { %692 = vrot.lane.b32.xlu1 %v2062_v5, %s1811_s14  ;;  %319 = vrot.lane.b32.xlu0 %v2062_v5, %s1795_s10  ;;  %s1822_s10 = smov 114   ;;  %s1826_s14 = smov 110  }
 0x290   : > { %714 = vrot.lane.b32.xlu1 %v2062_v5, %s1812_s6  ;;  %859 = vrot.lane.b32.xlu0 %v2047_v61, %s1818_s13  ;;  %s1827_s6 = smov 109  }
 0x294   : > { %736 = vrot.lane.b32.xlu1 %v2062_v5, %s1813_s5  ;;  %881 = vrot.lane.b32.xlu0 %v2047_v61, %s1819_s21  ;;  %s1828_s5 = smov 99  }
 0x298   : > { %758 = vrot.lane.b32.xlu1 %v2062_v5, %s1814_s7  ;;  %903 = vrot.lane.b32.xlu0 %v2047_v61, %s1820_s23  ;;  %s1829_s7 = smov 98  }
 0x29c   : > { %780 = vrot.lane.b32.xlu1 %v2062_v5, %s1815_s26  ;;  %925 = vrot.lane.b32.xlu0 %v2047_v61, %s1821_s9  ;;  %s1830_s26 = smov 97  }
 0x2a0   : > { %802 = vrot.lane.b32.xlu1 %v2062_v5, %s1816_s8  ;;  %947 = vrot.lane.b32.xlu0 %v2047_v61, %s1822_s10  ;;  %s1831_s8 = smov 96  }
 0x2a4   : > { %824 = vrot.lane.b32.xlu1 %v2062_v5, %s1817_s12  ;;  %969 = vrot.lane.b32.xlu0 %v2047_v61, %s1823_s28  ;;  %s1832_s12 = smov 95  }
 0x2a8   : > { %861 = vrot.lane.b32.xlu1 %v2062_v5, %s1818_s13  ;;  %991 = vrot.lane.b32.xlu0 %v2047_v61, %s1824_s20  ;;  %s1833_s13 = smov 94  }
 0x2ac   : > { %883 = vrot.lane.b32.xlu1 %v2062_v5, %s1819_s21  ;;  %1013 = vrot.lane.b32.xlu0 %v2047_v61, %s1825_s29  ;;  %s1834_s21 = smov 93  }
 0x2ae   : > { %v405_v8 = vpop.permute.xlu0 %404  ;;  %v2118_v9 = vpop.permute.xlu1 %317 }
 0x2b0   : > { %905 = vrot.lane.b32.xlu1 %v2062_v5, %s1820_s23  ;;  %1035 = vrot.lane.b32.xlu0 %v2047_v61, %s1826_s14  ;;  %s1835_s23 = smov 83  }
 0x2b2   : > { %v427_v10 = vpop.permute.xlu0 %426  ;;  %v2123_v11 = vpop.permute.xlu1 %338 }
 0x2b4   : > { %927 = vrot.lane.b32.xlu1 %v2062_v5, %s1821_s9  ;;  %1057 = vrot.lane.b32.xlu0 %v2047_v61, %s1827_s6  ;;  %s1836_s9 = smov 82  }
 0x2b6   : > { %v449_v12 = vpop.permute.xlu0 %448  ;;  %v361_v13 = vpop.permute.xlu1 %360 }
 0x2b8   : > { %949 = vrot.lane.b32.xlu1 %v2062_v5, %s1822_s10  ;;  %1079 = vrot.lane.b32.xlu0 %v2047_v61, %s1828_s5  ;;  %s1837_s10 = smov 81  }
 0x2ba   : > { %v471_v14 = vpop.permute.xlu0 %470  ;;  %v383_v15 = vpop.permute.xlu1 %382 }
 0x2bc   : > { %971 = vrot.lane.b32.xlu1 %v2062_v5, %s1823_s28  ;;  %1101 = vrot.lane.b32.xlu0 %v2047_v61, %s1829_s7  ;;  %s1838_s28 = smov 80  }
 0x2be   : > { %v2134_v16 = vpop.permute.xlu0 %492  ;;  %v2136_v17 = vpop.permute.xlu1 %340 }
 0x2c0   : > { %993 = vrot.lane.b32.xlu1 %v2062_v5, %s1824_s20  ;;  %1123 = vrot.lane.b32.xlu0 %v2047_v61, %s1830_s26  ;;  %s1839_s20 = smov 79  }
 0x2c2   : > { %v2142_v18 = vpop.permute.xlu0 %514  ;;  %v363_v19 = vpop.permute.xlu1 %362 }
 0x2c3   : > { %v2144_v20 = vsel %vm364_vm4, %v361_v13, %v363_v19  ;;  %v2146_v21 = vsel %vm364_vm4, %v363_v19, %v361_v13  ;;  %vm672_vm4 = vcmp.lt.s32.totalorder %v2023_v7, 17 }
 0x2c4   : > { %v371_v22 = vcombine.low %v2146_v21, %v2144_v20  ;;  %1015 = vrot.lane.b32.xlu1 %v2062_v5, %s1825_s29  ;;  %1145 = vrot.lane.b32.xlu0 %v2047_v61, %s1831_s8  ;;  %s1840_s29 = smov 78  }
 0x2c6   : > { %v2155_v23 = vpop.permute.xlu0 %536  ;;  %v385_v24 = vpop.permute.xlu1 %384 }
 0x2c7   : > { %v2157_v25 = vsel %vm386_vm5, %v383_v15, %v385_v24  ;;  %v2159_v26 = vsel %vm386_vm5, %v385_v24, %v383_v15  ;;  %vm694_vm5 = vcmp.lt.s32.totalorder %v2023_v7, 16 }
 0x2c8   : > { %v393_v27 = vcombine.low %v2159_v26, %v2157_v25  ;;  %1037 = vrot.lane.b32.xlu1 %v2062_v5, %s1826_s14  ;;  %1167 = vrot.lane.b32.xlu0 %v2047_v61, %s1832_s12  ;;  %s1841_s14 = smov 77  }
 0x2ca   : > { %v2168_v28 = vpop.permute.xlu0 %558  ;;  %v407_v29 = vpop.permute.xlu1 %406 }
 0x2cb   : > { %v2170_v30 = vsel %vm408_vm6, %v405_v8, %v407_v29  ;;  %v2172_v31 = vsel %vm408_vm6, %v407_v29, %v405_v8  ;;  %vm716_vm6 = vcmp.lt.s32.totalorder %v2023_v7, 15 }
 0x2cc   : > { %v415_v32 = vcombine.low %v2172_v31, %v2170_v30  ;;  %1059 = vrot.lane.b32.xlu1 %v2062_v5, %s1827_s6  ;;  %1189 = vrot.lane.b32.xlu0 %v2047_v61, %s1833_s13  ;;  %s1536_s6 = sshll.u32 %s1890_s19, 7  ;;  %s1843_s19 = smov [#allocation7]  }
 0x2ce   : > { %v2181_v33 = vpop.permute.xlu0 %580  ;;  %v429_v34 = vpop.permute.xlu1 %428 }
 0x2cf   : > { %v2183_v35 = vsel %vm430_vm7, %v427_v10, %v429_v34  ;;  %v2185_v37 = vsel %vm430_vm7, %v429_v34, %v427_v10  ;;  %vm738_vm7 = vcmp.lt.s32.totalorder %v2023_v7, 14 }
 0x2d0   : > { %v437_v38 = vcombine.low %v2185_v37, %v2183_v35  ;;  %1081 = vrot.lane.b32.xlu1 %v2062_v5, %s1828_s5  ;;  %1211 = vrot.lane.b32.xlu0 %v2047_v61, %s1834_s21  ;;  %s228_s5 = scalar_lea.vmem [#allocation7], %s1526_s11  ;;  %s1720_s11 = sshll.u32 %s1843_s19, 4  ;;  %s1721_s11 = int_to_ptr.vmem [resolvable:$false] %s1720_s11 }
 0x2d2   : > { %v2194_v39 = vpop.permute.xlu0 %602  ;;  %v451_v40 = vpop.permute.xlu1 %450 }
 0x2d3   : > { %v2196_v41 = vsel %vm452_vm8, %v449_v12, %v451_v40  ;;  %v2198_v42 = vsel %vm452_vm8, %v451_v40, %v449_v12  ;;  %v1842_v40 = vmov 1983009808   ;;  %vm760_vm8 = vcmp.lt.s32.totalorder %v2023_v7, 13 }
 0x2d4   : > { %v459_v43 = vcombine.low %v2198_v42, %v2196_v41  ;;  %1103 = vrot.lane.b32.xlu1 %v2062_v5, %s1829_s7  ;;  %1233 = vrot.lane.b32.xlu0 %v2047_v61, %s1835_s23  ;;  %s1438_s7 = sshll.u32 %s228_s5, 4  ;;  %s2635_s7 = int_to_ptr.vmem [resolvable:$true] %s1438_s7 }
 0x2d5   : > { %p1723_p10 = scmp.lt.s32.totalorder %s2635_s7, %s1721_s11 }
 0x2d6   : > { %v2207_v44 = vpop.permute.xlu0 %624  ;;  %v473_v45 = vpop.permute.xlu1 %472 }
 0x2d7   : > { %v2209_v46 = vsel %vm474_vm9, %v471_v14, %v473_v45  ;;  %v2211_v47 = vsel %vm474_vm9, %v473_v45, %v471_v14  ;;  %v329_v45 = vunpack.c.l.s4 %v1842_v40  ;;  %vm782_vm9 = vcmp.lt.s32.totalorder %v2023_v7, 3 }
 0x2d8   : > { %v481_v48 = vcombine.low %v2211_v47, %v2209_v46  ;;  %1125 = vrot.lane.b32.xlu1 %v2062_v5, %s1830_s26  ;;  %1255 = vrot.lane.b32.xlu0 %v2047_v61, %s1836_s9 }
 0x2da   : > { %v2220_v49 = vpop.permute.xlu0 %646  ;;  %v495_v50 = vpop.permute.xlu1 %494 }
 0x2db   : > { %v2223_v51 = vsel %vm496_vm10, %v2134_v16, %v495_v50  ;;  %v2226_v52 = vsel %vm496_vm10, %v495_v50, %v2134_v16  ;;  %vm804_vm10 = vcmp.lt.s32.totalorder %v2023_v7, 2 }
 0x2dc   : > { %1147 = vrot.lane.b32.xlu1 %v2062_v5, %s1831_s8  ;;  %1277 = vrot.lane.b32.xlu0 %v2047_v61, %s1837_s10  ;;  %v2696_v41 = vcombine.low %v2226_v52, %v2223_v51 }
 0x2de   : > { %v2235_v54 = vpop.permute.xlu0 %668  ;;  %v517_v55 = vpop.permute.xlu1 %516 }
 0x2df   : > { %v2238_v56 = vsel %vm518_vm11, %v2142_v18, %v517_v55  ;;  %v2241_v57 = vsel %vm518_vm11, %v517_v55, %v2142_v18  ;;  %vm826_vm11 = vcmp.lt.s32.totalorder %v2023_v7, 1 }
 0x2e0   : > { %1169 = vrot.lane.b32.xlu1 %v2062_v5, %s1832_s12  ;;  %1299 = vrot.lane.b32.xlu0 %v2047_v61, %s1838_s28  ;;  %v2697_v46 = vcombine.low %v2241_v57, %v2238_v56  ;;  %s2633_s12 = scalar_lea.hbm %s2681_s4, %s1536_s6 }
 0x2e2   : > { %v2250_v59 = vpop.permute.xlu0 %690  ;;  %v539_v60 = vpop.permute.xlu1 %538 }
 0x2e3   : > { %v2253_v62 = vsel %vm540_vm12, %v2155_v23, %v539_v60  ;;  %v2256_v63 = vsel %vm540_vm12, %v539_v60, %v2155_v23  ;;  %v344_v60 = vsel %vm342_vm1, %v2136_v17, %v2123_v11  ;;  %vm863_vm12 = vcmp.lt.s32.totalorder %v2023_v7, 127 }
 0x2e4   : > { %1191 = vrot.lane.b32.xlu1 %v2062_v5, %s1833_s13  ;;  %1321 = vrot.lane.b32.xlu0 %v2047_v61, %s1839_s20  ;;  %v2698_v51 = vcombine.low %v2256_v63, %v2253_v62  ;;  %s1424_s13 = scalar_lea.sflag [#allocation4], %s2005_s25 }
 0x2e6   : > { %v2265_v1 = vpop.permute.xlu0 %712  ;;  %v561_v2 = vpop.permute.xlu1 %560 }
 0x2e7   : > { %v2268_v3 = vsel %vm562_vm13, %v2168_v28, %v561_v2  ;;  %v2271_v4 = vsel %vm562_vm13, %v561_v2, %v2168_v28  ;;  %v330_v2 = vunpack.c.0.s8 %v329_v45  ;;  %vm885_vm13 = vcmp.lt.s32.totalorder %v2023_v7, 126 }
 0x2e8   : > { %1213 = vrot.lane.b32.xlu1 %v2062_v5, %s1834_s21  ;;  %1343 = vrot.lane.b32.xlu0 %v2047_v61, %s1840_s29  ;;  %v2699_v56 = vcombine.low %v2271_v4, %v2268_v3  ;;  %s1716_s21 = scalar_lea.vmem %s2635_s7, 128 }
 0x2e9   : > { %v2339_v40 = vsub.s32 %v330_v2, %v2021_v6  ;;  %p1717_p4 = scmp.ne.s32.totalorder %s2635_s7, %s1716_s21 }
 0x2ea   : > { %v2280_v10 = vpop.permute.xlu0 %734  ;;  %v583_v12 = vpop.permute.xlu1 %582 }
 0x2eb   : > { %v2283_v13 = vsel %vm584_vm14, %v2181_v33, %v583_v12  ;;  %v2286_v14 = vsel %vm584_vm14, %v583_v12, %v2181_v33  ;;  %v378_v2 = vrot.slane %v371_v22, %v2339_v40  ;;  %v422_v21 = vrot.slane %v415_v32, %v2339_v40  ;;  %p1718_p6 = pnand %p1717_p4, %p1960_p12 }
 0x2ec   : > { %1235 = vrot.lane.b32.xlu1 %v2062_v5, %s1835_s23  ;;  %1365 = vrot.lane.b32.xlu0 %v2047_v61, %s1841_s14  ;;  %v444_v25 = vrot.slane %v437_v38, %v2339_v40  ;;  %v466_v30 = vrot.slane %v459_v43, %v2339_v40  ;;  %v488_v35 = vrot.slane %v481_v48, %v2339_v40  ;;  %v478_v38 = vld [vmem:[#allocation5 + $0x1c] sm:$0xf]  ;;  %vm907_vm14 = vcmp.lt.s32.totalorder %v2023_v7, 125  ;;  %s1722_s23 = scalar_lea.vmem %s1721_s11, 256 }
 0x2ed   : > { %v510_v42 = vrot.slane %v2696_v41, %v2339_v40  ;;  %v532_v47 = vrot.slane %v2697_v46, %v2339_v40  ;;  %v554_v52 = vrot.slane %v2698_v51, %v2339_v40  ;;  %v576_v57 = vrot.slane %v2699_v56, %v2339_v40  ;;  %v654_v51 = vld [vmem:[#allocation5 + $0x3c] sm:$0xf]  ;;  %p1719_p8 = pneg %p1718_p6  ;;  %p1724_p13 = scmp.lt.s32.totalorder %s1722_s23, %s1716_s21 }
 0x2ee   : > { %v2295_v16 = vpop.permute.xlu0 %756  ;;  %v605_v18 = vpop.permute.xlu1 %604 }
 0x2ef   : > { %v2298_v19 = vsel %vm606_vm15, %v2194_v39, %v605_v18  ;;  %v2301_v23 = vsel %vm606_vm15, %v605_v18, %v2194_v39  ;;  %vm929_vm15 = vcmp.lt.s32.totalorder %v2023_v7, 115  ;;  %p1725_p3 = por %p1724_p13, %p1723_p10 }
 0x2f0   : > { %1257 = vrot.lane.b32.xlu1 %v2062_v5, %s1836_s9 }
 0x2f1   : > { %p1726_p7 = pnand %p1725_p3, %p1719_p8 }
 0x2f2   : > { %v2308_v28 = vpop.permute.xlu0 %778  ;;  %v627_v29 = vpop.permute.xlu1 %626 }
 0x2f3   : > { %v2311_v33 = vsel %vm628_vm0, %v2207_v44, %v627_v29  ;;  %v2314_v34 = vsel %vm628_vm0, %v627_v29, %v2207_v44  ;;  %v343_v44 = vsel %vm342_vm1, %v2123_v11, %v2136_v17  ;;  %vm951_vm0 = vcmp.lt.s32.totalorder %v2023_v7, 114 }
 0x2f4   : > { %1279 = vrot.lane.b32.xlu1 %v2062_v5, %s1837_s10  ;;  %v349_v29 = vcombine.low %v344_v60, %v343_v44  ;;  %v346_v44 = vld [vmem:[#allocation5 + $0x4] sm:$0xf]  ;;  %v324_v60 = vld [vmem:[#allocation5] sm:$0xf]  ;;  %vm973_vm1 = vcmp.lt.s32.totalorder %v2023_v7, 113 }
 0x2f6   : > { %v2321_v50 = vpop.permute.xlu0 %800  ;;  %v2323_v55 = vpop.permute.xlu1 %648  ;;  %v356_v17 = vrot.slane %v349_v29, %v2339_v40 }
 0x2f7   : > { %v651_v62 = vsel %vm650_vm3, %v2220_v49, %v2323_v55  ;;  %v652_v63 = vsel %vm650_vm3, %v2323_v55, %v2220_v49  ;;  %vm1017_vm3 = vcmp.lt.s32.totalorder %v2023_v7, 111 }
 0x2f8   : > { %1301 = vrot.lane.b32.xlu1 %v2062_v5, %s1838_s28 }
 0x2fa   : > { %v2331_v12 = vpop.permute.xlu0 %822  ;;  %v2333_v18 = vpop.permute.xlu1 %670 }
 0x2fb   : > { %v674_v49 = vsel %vm672_vm4, %v2333_v18, %v2235_v54 }
 0x2fc   : > { %1323 = vrot.lane.b32.xlu1 %v2062_v5, %s1839_s20 }
 0x2fe   : > { %v2341_v39 = vpop.permute.xlu1 %692  ;;  %v320_v24 = vpop.permute.xlu0 %319 }
 0x2ff   : > { %v322_v15 = vsel %vm321_vm2, %v2118_v9, %v320_v24  ;;  %v323_v11 = vsel %vm321_vm2, %v320_v24, %v2118_v9  ;;  %v368_v9 = vld [vmem:[#allocation5 + $0x8] sm:$0xf]  ;;  %v358_v24 = vmul.f32 %v356_v17, %v346_v44  ;;  %v412_v44 = vld [vmem:[#allocation5 + $0x10] sm:$0xf]  ;;  %vm995_vm2 = vcmp.lt.s32.totalorder %v2023_v7, 112 }
 0x300   : > { %v327_v45 = vcombine.low %v323_v11, %v322_v15  ;;  %1345 = vrot.lane.b32.xlu1 %v2062_v5, %s1840_s29  ;;  %v400_v15 = vrot.slane %v393_v27, %v2339_v40  ;;  %v390_v11 = vld [vmem:[#allocation5 + $0xc] sm:$0xf]  ;;  %v380_v20 = vmul.f32 %v378_v2, %v368_v9  ;;  %v434_v27 = vld [vmem:[#allocation5 + $0x14] sm:$0xf]  ;;  %v456_v2 = vld [vmem:[#allocation5 + $0x18] sm:$0xf] }
 0x301   : > { %v446_v9 = vmul.f32 %v444_v25, %v434_v27 }
 0x302   : > { %v334_v8 = vrot.slane %v327_v45, %v2339_v40  ;;  %v2353_v0 = vpop.permute.xlu1 %714  ;;  %v2355_v58 = vpop.permute.xlu0 %859  ;;  %v402_v53 = vmul.f32 %v400_v15, %v390_v11  ;;  %v490_v11 = vmul.f32 %v488_v35, %v478_v38  ;;  %v673_v38 = vsel %vm672_vm4, %v2235_v54, %v2333_v18 }
 0x303   : > { %v2702_v18 = vcombine.low %v2314_v34, %v2311_v33  ;;  %v679_v46 = vcombine.low %v674_v49, %v673_v38  ;;  %vm1039_vm4 = vcmp.lt.s32.totalorder %v2023_v7, 110 }
 0x304   : > { %v336_v29 = vmul.f32 %v334_v8, %v324_v60  ;;  %1367 = vrot.lane.b32.xlu1 %v2062_v5, %s1841_s14  ;;  %v424_v8 = vmul.f32 %v422_v21, %v412_v44 }
 0x306   : > { %v359_v22 = vadd.f32 %v358_v24, %v336_v29  ;;  %v2367_v45 = vpop.permute.xlu1 %736  ;;  %v2369_v17 = vpop.permute.xlu0 %881  ;;  %v468_v24 = vmul.f32 %v466_v30, %v456_v2  ;;  %v500_v29 = vld [vmem:[#allocation5 + $0x20] sm:$0xf]  ;;  %v566_v30 = vld [vmem:[#allocation5 + $0x2c] sm:$0xf]  ;;  %v2700_v2 = vcombine.low %v2286_v14, %v2283_v13  ;;  %v2701_v13 = vcombine.low %v2301_v23, %v2298_v19 }
 0x307   : > { %v512_v21 = vmul.f32 %v510_v42, %v500_v29  ;;  %v578_v55 = vmul.f32 %v576_v57, %v566_v30  ;;  %v610_v42 = vld [vmem:[#allocation5 + $0x34] sm:$0xf]  ;;  %v696_v29 = vsel %vm694_vm5, %v2341_v39, %v2250_v59 }
 0x308   : > { %v381_v26 = vadd.f32 %v380_v20, %v359_v22  ;;  %v522_v20 = vld [vmem:[#allocation5 + $0x24] sm:$0xf]  ;;  %v620_v14 = vrot.slane %v2701_v13, %v2339_v40  ;;  %v720_v13 = vld [vmem:[#allocation5 + $0x48] sm:$0xf] }
 0x309   : > { %v534_v27 = vmul.f32 %v532_v47, %v522_v20 }
 0x30a   : > { %v403_v31 = vadd.f32 %v402_v53, %v381_v26  ;;  %v2379_v32 = vpop.permute.xlu1 %758  ;;  %v2381_v60 = vpop.permute.xlu0 %903  ;;  %v544_v26 = vld [vmem:[#allocation5 + $0x28] sm:$0xf]  ;;  %v622_v33 = vmul.f32 %v620_v14, %v610_v42 }
 0x30b   : > { %v761_v30 = vsel %vm760_vm8, %v2295_v16, %v2379_v32 }
 0x30c   : > { %v425_v37 = vadd.f32 %v424_v8, %v403_v31  ;;  %v556_v31 = vmul.f32 %v554_v52, %v544_v26  ;;  %v739_v52 = vsel %vm738_vm7, %v2280_v10, %v2367_v45 }
 0x30e   : > { %v447_v43 = vadd.f32 %v446_v9, %v425_v37  ;;  %v2391_v53 = vpop.permute.xlu1 %780  ;;  %v2393_v15 = vpop.permute.xlu0 %925  ;;  %v598_v9 = vrot.slane %v2700_v2, %v2339_v40  ;;  %v588_v37 = vld [vmem:[#allocation5 + $0x30] sm:$0xf]  ;;  %v698_v2 = vld [vmem:[#allocation5 + $0x44] sm:$0xf] }
 0x310   : > { %v469_v48 = vadd.f32 %v468_v24, %v447_v43  ;;  %v657_v24 = vcombine.low %v652_v63, %v651_v62  ;;  %v695_v43 = vsel %vm694_vm5, %v2250_v59, %v2341_v39  ;;  %v600_v54 = vmul.f32 %v598_v9, %v588_v37 }
 0x311   : > { %v717_v59 = vsel %vm716_vm6, %v2265_v1, %v2353_v0  ;;  %v718_v39 = vsel %vm716_vm6, %v2353_v0, %v2265_v1  ;;  %v701_v20 = vcombine.low %v696_v29, %v695_v43  ;;  %v686_v1 = vrot.slane %v679_v46, %v2339_v40  ;;  %v742_v43 = vld [vmem:[#allocation5 + $0x4c] sm:$0xf] }
 0x312   : > { %v491_v22 = vadd.f32 %v490_v11, %v469_v48  ;;  %v2404_v44 = vpop.permute.xlu1 %802  ;;  %v2406_v25 = vpop.permute.xlu0 %947  ;;  %v642_v11 = vrot.slane %v2702_v18, %v2339_v40  ;;  %v632_v48 = vld [vmem:[#allocation5 + $0x38] sm:$0xf]  ;;  %v664_v34 = vrot.slane %v657_v24, %v2339_v40  ;;  %v783_v9 = vsel %vm782_vm9, %v2308_v28, %v2391_v53 }
 0x313   : > { %v708_v62 = vrot.slane %v701_v20, %v2339_v40  ;;  %v805_v14 = vsel %vm804_vm10, %v2321_v50, %v2404_v44  ;;  %v806_v24 = vsel %vm804_vm10, %v2404_v44, %v2321_v50  ;;  %vm1061_vm5 = vcmp.lt.s32.totalorder %v2023_v7, 109 }
 0x314   : > { %v513_v8 = vadd.f32 %v512_v21, %v491_v22  ;;  %v740_v22 = vsel %vm738_vm7, %v2367_v45, %v2280_v10  ;;  %v644_v0 = vmul.f32 %v642_v11, %v632_v48  ;;  %v762_v10 = vsel %vm760_vm8, %v2379_v32, %v2295_v16  ;;  %v764_v48 = vld [vmem:[#allocation5 + $0x50] sm:$0xf] }
 0x315   : > { %v666_v45 = vmul.f32 %v664_v34, %v654_v51  ;;  %v767_v38 = vcombine.low %v762_v10, %v761_v30  ;;  %v811_v11 = vcombine.low %v806_v24, %v805_v14  ;;  %v786_v34 = vld [vmem:[#allocation5 + $0x54] sm:$0xf]  ;;  %v848_v30 = vcombine.low %v2047_v61, %v2062_v5 }
 0x316   : > { %v535_v3 = vadd.f32 %v534_v27, %v513_v8  ;;  %v2422_v4 = vpop.permute.xlu1 %824  ;;  %v2424_v35 = vpop.permute.xlu0 %969  ;;  %v723_v27 = vcombine.low %v718_v39, %v717_v59  ;;  %v676_v8 = vld [vmem:[#allocation5 + $0x40] sm:$0xf]  ;;  %vm1083_vm6 = vcmp.lt.s32.totalorder %v2023_v7, 99  ;;  %vm1105_vm7 = vcmp.lt.s32.totalorder %v2023_v7, 98 }
 0x317   : > { %v688_v37 = vmul.f32 %v686_v1, %v676_v8  ;;  %v774_v18 = vrot.slane %v767_v38, %v2339_v40  ;;  %v827_v50 = vsel %vm826_vm11, %v2331_v12, %v2422_v4  ;;  %v828_v44 = vsel %vm826_vm11, %v2422_v4, %v2331_v12  ;;  %v808_v1 = vld [vmem:[#allocation5 + $0x58] sm:$0xf] }
 0x318   : > { %v557_v41 = vadd.f32 %v556_v31, %v535_v3  ;;  %v745_v31 = vcombine.low %v740_v22, %v739_v52  ;;  %v784_v3 = vsel %vm782_vm9, %v2391_v53, %v2308_v28  ;;  %v730_v32 = vrot.slane %v723_v27, %v2339_v40 }
 0x319   : > { %v710_v28 = vmul.f32 %v708_v62, %v698_v2  ;;  %v789_v42 = vcombine.low %v784_v3, %v783_v9  ;;  %v818_v51 = vrot.slane %v811_v11, %v2339_v40  ;;  %v833_v52 = vcombine.low %v828_v44, %v827_v50  ;;  %v830_v62 = vld [vmem:[#allocation5 + $0x5c] sm:$0xf] }
 0x31a   : > { %v579_v19 = vadd.f32 %v578_v55, %v557_v41  ;;  %v2444_v23 = vpop.permute.xlu1 %861  ;;  %v2446_v47 = vpop.permute.xlu0 %991  ;;  %v752_v41 = vrot.slane %v745_v31, %v2339_v40  ;;  %v855_v3 = vrot.slane %v848_v30, %v2339_v40  ;;  %vm1127_vm8 = vcmp.lt.s32.totalorder %v2023_v7, 97 }
 0x31b   : > { %v820_v12 = vmul.f32 %v818_v51, %v808_v1  ;;  %v840_v4 = vrot.slane %v833_v52, %v2339_v40  ;;  %v865_v31 = vsel %vm863_vm12, %v2444_v23, %v2355_v58  ;;  %v933_v1 = vld [vmem:[#allocation5 + $0x70] sm:$0xf]  ;;  %vm1149_vm9 = vcmp.lt.s32.totalorder %v2023_v7, 96 }
 0x31c   : > { %v601_v21 = vadd.f32 %v600_v54, %v579_v19  ;;  %v732_v54 = vmul.f32 %v730_v32, %v720_v13  ;;  %v754_v39 = vmul.f32 %v752_v41, %v742_v43  ;;  %v845_v32 = vld [vmem:[#allocation5 + $0x60] sm:$0xf]  ;;  %vm1171_vm10 = vcmp.lt.s32.totalorder %v2023_v7, 95 }
 0x31d   : > { %v842_v9 = vmul.f32 %v840_v4, %v830_v62  ;;  %v955_v62 = vld [vmem:[#allocation5 + $0x74] sm:$0xf]  ;;  %vm1193_vm11 = vcmp.lt.s32.totalorder %v2023_v7, 94 }
 0x31e   : > { %v623_v26 = vadd.f32 %v622_v33, %v601_v21  ;;  %v2468_v56 = vpop.permute.xlu1 %883  ;;  %v2470_v57 = vpop.permute.xlu0 %1013  ;;  %v796_v33 = vrot.slane %v789_v42, %v2339_v40  ;;  %v776_v21 = vmul.f32 %v774_v18, %v764_v48  ;;  %v889_v18 = vld [vmem:[#allocation5 + $0x68] sm:$0xf] }
 0x31f   : > { %v886_v61 = vsel %vm885_vm13, %v2369_v17, %v2468_v56  ;;  %v887_v5 = vsel %vm885_vm13, %v2468_v56, %v2369_v17  ;;  %vm1237_vm13 = vcmp.lt.s32.totalorder %v2023_v7, 83 }
 0x320   : > { %v645_v63 = vadd.f32 %v644_v0, %v623_v26  ;;  %v798_v27 = vmul.f32 %v796_v33, %v786_v34  ;;  %v892_v14 = vcombine.low %v886_v61, %v887_v5 }
 0x322   : > { %v667_v16 = vadd.f32 %v666_v45, %v645_v63  ;;  %v906_v49 = vpop.permute.xlu1 %905  ;;  %v2491_v55 = vpop.permute.xlu0 %1035  ;;  %v864_v63 = vsel %vm863_vm12, %v2355_v58, %v2444_v23  ;;  %v857_v58 = vmul.f32 %v855_v3, %v845_v32  ;;  %v899_v17 = vrot.slane %v892_v14, %v2339_v40  ;;  %v999_v14 = vld [vmem:[#allocation5 + $0x7c] sm:$0xf] }
 0x323   : > { %v909_v41 = vsel %vm907_vm14, %v906_v49, %v2381_v60  ;;  %vm1215_vm12 = vcmp.lt.s32.totalorder %v2023_v7, 93 }
 0x324   : > { %v689_v53 = vadd.f32 %v688_v37, %v667_v16  ;;  %v870_v37 = vcombine.low %v864_v63, %v865_v31  ;;  %v901_v44 = vmul.f32 %v899_v17, %v889_v18 }
 0x326   : > { %v711_v29 = vadd.f32 %v710_v28, %v689_v53  ;;  %v928_v46 = vpop.permute.xlu1 %927  ;;  %v2504_v19 = vpop.permute.xlu0 %1057  ;;  %v877_v23 = vrot.slane %v870_v37, %v2339_v40  ;;  %v867_v28 = vld [vmem:[#allocation5 + $0x64] sm:$0xf]  ;;  %v908_v53 = vsel %vm907_vm14, %v2381_v60, %v906_v49  ;;  %v977_v37 = vld [vmem:[#allocation5 + $0x78] sm:$0xf]  ;;  %vm1259_vm14 = vcmp.lt.s32.totalorder %v2023_v7, 82 }
 0x327   : > { %v914_v56 = vcombine.low %v908_v53, %v909_v41  ;;  %v930_v11 = vsel %vm929_vm15, %v2393_v15, %v928_v46  ;;  %v931_v48 = vsel %vm929_vm15, %v928_v46, %v2393_v15  ;;  %vm1281_vm15 = vcmp.lt.s32.totalorder %v2023_v7, 81 }
 0x328   : > { %v733_v59 = vadd.f32 %v732_v54, %v711_v29  ;;  %v879_v43 = vmul.f32 %v877_v23, %v867_v28  ;;  %v936_v49 = vcombine.low %v930_v11, %v931_v48 }
 0x329   : > { %v921_v60 = vrot.slane %v914_v56, %v2339_v40  ;;  %v1021_v56 = vld [vmem:[#allocation5 + $0x80] sm:$0xf] }
 0x32a   : > { %v755_v20 = vadd.f32 %v754_v39, %v733_v59  ;;  %v950_v22 = vpop.permute.xlu1 %949  ;;  %v2512_v0 = vpop.permute.xlu0 %1079  ;;  %v911_v39 = vld [vmem:[#allocation5 + $0x6c] sm:$0xf]  ;;  %v943_v15 = vrot.slane %v936_v49, %v2339_v40 }
 0x32b   : > { %v952_v33 = vsel %vm951_vm0, %v2406_v25, %v950_v22  ;;  %v953_v34 = vsel %vm951_vm0, %v950_v22, %v2406_v25  ;;  %v923_v51 = vmul.f32 %v921_v60, %v911_v39  ;;  %v1043_v39 = vld [vmem:[#allocation5 + $0x84] sm:$0xf]  ;;  %vm1303_vm0 = vcmp.lt.s32.totalorder %v2023_v7, 80 }
 0x32c   : > { %v777_v26 = vadd.f32 %v776_v21, %v755_v20  ;;  %v958_v46 = vcombine.low %v952_v33, %v953_v34 }
 0x32e   : > { %v799_v8 = vadd.f32 %v798_v27, %v777_v26  ;;  %v972_v10 = vpop.permute.xlu1 %971  ;;  %v2518_v45 = vpop.permute.xlu0 %1101  ;;  %v965_v25 = vrot.slane %v958_v46, %v2339_v40 }
 0x32f   : > { %v974_v26 = vsel %vm973_vm1, %v2424_v35, %v972_v10  ;;  %v975_v27 = vsel %vm973_vm1, %v972_v10, %v2424_v35  ;;  %vm1325_vm1 = vcmp.lt.s32.totalorder %v2023_v7, 79 }
 0x330   : > { %v821_v2 = vadd.f32 %v820_v12, %v799_v8  ;;  %v945_v12 = vmul.f32 %v943_v15, %v933_v1  ;;  %v980_v22 = vcombine.low %v974_v26, %v975_v27  ;;  %v1065_v26 = vld [vmem:[#allocation5 + $0x88] sm:$0xf] }
 0x332   : > { %v994_v16 = vpop.permute.xlu1 %993  ;;  %v843_v38 = vadd.f32 %v842_v9, %v821_v2  ;;  %v2531_v13 = vpop.permute.xlu0 %1123  ;;  %v967_v9 = vmul.f32 %v965_v25, %v955_v62  ;;  %v987_v35 = vrot.slane %v980_v22, %v2339_v40  ;;  %v1087_v22 = vld [vmem:[#allocation5 + $0x8c] sm:$0xf] }
 0x333   : > { %v996_v63 = vsel %vm995_vm2, %v2446_v47, %v994_v16  ;;  %v997_v31 = vsel %vm995_vm2, %v994_v16, %v2446_v47  ;;  %vm1347_vm2 = vcmp.lt.s32.totalorder %v2023_v7, 78 }
 0x334   : > { %v858_v42 = vadd.f32 %v857_v58, %v843_v38  ;;  %v1002_v10 = vcombine.low %v996_v63, %v997_v31  ;;  %v989_v58 = vmul.f32 %v987_v35, %v977_v37 }
 0x336   : > { %v1016_v24 = vpop.permute.xlu1 %1015  ;;  %v2538_v29 = vpop.permute.xlu0 %1145  ;;  %v880_v50 = vadd.f32 %v879_v43, %v858_v42  ;;  %v1009_v47 = vrot.slane %v1002_v10, %v2339_v40 }
 0x337   : > { %v1018_v32 = vsel %vm1017_vm3, %v2470_v57, %v1016_v24  ;;  %v1019_v61 = vsel %vm1017_vm3, %v1016_v24, %v2470_v57  ;;  %vm1369_vm3 = vcmp.lt.s32.totalorder %v2023_v7, 77 }
 0x338   : > { %v902_v20 = vadd.f32 %v901_v44, %v880_v50  ;;  %v1024_v16 = vcombine.low %v1018_v32, %v1019_v61  ;;  %v1011_v42 = vmul.f32 %v1009_v47, %v999_v14  ;;  %v1131_v61 = vld [vmem:[#allocation5 + $0x94] sm:$0xf] }
 0x33a   : > { %v1038_v54 = vpop.permute.xlu1 %1037  ;;  %v2547_v21 = vpop.permute.xlu0 %1167  ;;  %v924_v8 = vadd.f32 %v923_v51, %v902_v20  ;;  %v1031_v57 = vrot.slane %v1024_v16, %v2339_v40 }
 0x33b   : > { %v1040_v28 = vsel %vm1039_vm4, %v2491_v55, %v1038_v54  ;;  %v1041_v53 = vsel %vm1039_vm4, %v1038_v54, %v2491_v55 }
 0x33c   : > { %v946_v2 = vadd.f32 %v945_v12, %v924_v8  ;;  %v1046_v24 = vcombine.low %v1040_v28, %v1041_v53  ;;  %v1033_v50 = vmul.f32 %v1031_v57, %v1021_v56 }
 0x33e   : > { %v1060_v59 = vpop.permute.xlu1 %1059  ;;  %v2554_v4 = vpop.permute.xlu0 %1189  ;;  %v968_v5 = vadd.f32 %v967_v9, %v946_v2  ;;  %v1053_v44 = vrot.slane %v1046_v24, %v2339_v40 }
 0x33f   : > { %v1062_v18 = vsel %vm1061_vm5, %v2504_v19, %v1060_v59  ;;  %v1063_v11 = vsel %vm1061_vm5, %v1060_v59, %v2504_v19 }
 0x340   : > { %v990_v41 = vadd.f32 %v989_v58, %v968_v5  ;;  %v1068_v60 = vcombine.low %v1062_v18, %v1063_v11  ;;  %v1055_v15 = vmul.f32 %v1053_v44, %v1043_v39  ;;  %v1197_v44 = vld [vmem:[#allocation5 + $0xa0] sm:$0xf] }
 0x342   : > { %v1082_v52 = vpop.permute.xlu1 %1081  ;;  %v2563_v38 = vpop.permute.xlu0 %1211  ;;  %v1012_v48 = vadd.f32 %v1011_v42, %v990_v41  ;;  %v1075_v46 = vrot.slane %v1068_v60, %v2339_v40 }
 0x343   : > { %v1084_v55 = vsel %vm1083_vm6, %v2512_v0, %v1082_v52  ;;  %v1085_v54 = vsel %vm1083_vm6, %v1082_v52, %v2512_v0 }
 0x344   : > { %v1034_v19 = vadd.f32 %v1033_v50, %v1012_v48  ;;  %v1090_v59 = vcombine.low %v1084_v55, %v1085_v54  ;;  %v1077_v62 = vmul.f32 %v1075_v46, %v1065_v26 }
 0x346   : > { %v1104_v30 = vpop.permute.xlu1 %1103  ;;  %v2571_v43 = vpop.permute.xlu0 %1233  ;;  %v1056_v8 = vadd.f32 %v1055_v15, %v1034_v19  ;;  %v1097_v12 = vrot.slane %v1090_v59, %v2339_v40  ;;  %v1219_v19 = vld [vmem:[#allocation5 + $0xa4] sm:$0xf] }
 0x347   : > { %v1106_v33 = vsel %vm1105_vm7, %v2518_v45, %v1104_v30  ;;  %v1107_v34 = vsel %vm1105_vm7, %v1104_v30, %v2518_v45 }
 0x348   : > { %v1112_v52 = vcombine.low %v1106_v33, %v1107_v34  ;;  %v1099_v37 = vmul.f32 %v1097_v12, %v1087_v22 }
 0x34a   : > { %v1126_v3 = vpop.permute.xlu1 %1125  ;;  %v1256_v20 = vpop.permute.xlu0 %1255  ;;  %v1119_v63 = vrot.slane %v1112_v52, %v2339_v40  ;;  %v1241_v52 = vld [vmem:[#allocation5 + $0xa8] sm:$0xf] }
 0x34b   : > { %v1128_v51 = vsel %vm1127_vm8, %v2531_v13, %v1126_v3  ;;  %v1129_v0 = vsel %vm1127_vm8, %v1126_v3, %v2531_v13  ;;  %v1078_v3 = vadd.f32 %v1077_v62, %v1056_v8 }
 0x34c   : > { %v1134_v25 = vcombine.low %v1128_v51, %v1129_v0 }
 0x34d   : > { %v1100_v41 = vadd.f32 %v1099_v37, %v1078_v3  ;;  %v1307_v37 = vld [vmem:[#allocation5 + $0xb4] sm:$0xf] }
 0x34e   : > { %v1148_v23 = vpop.permute.xlu1 %1147  ;;  %v1278_v2 = vpop.permute.xlu0 %1277  ;;  %v1141_v32 = vrot.slane %v1134_v25, %v2339_v40  ;;  %v1263_v25 = vld [vmem:[#allocation5 + $0xac] sm:$0xf] }
 0x34f   : > { %v1150_v27 = vsel %vm1149_vm9, %v2538_v29, %v1148_v23  ;;  %v1151_v45 = vsel %vm1149_vm9, %v1148_v23, %v2538_v29  ;;  %v1109_v29 = vld [vmem:[#allocation5 + $0x90] sm:$0xf] }
 0x350   : > { %v1156_v31 = vcombine.low %v1150_v27, %v1151_v45  ;;  %v1121_v47 = vmul.f32 %v1119_v63, %v1109_v29  ;;  %v1143_v42 = vmul.f32 %v1141_v32, %v1131_v61  ;;  %v1285_v63 = vld [vmem:[#allocation5 + $0xb0] sm:$0xf] }
 0x352   : > { %v1170_v17 = vpop.permute.xlu1 %1169  ;;  %v1163_v16 = vrot.slane %v1156_v31, %v2339_v40  ;;  %v1300_v24 = vpop.permute.xlu0 %1299  ;;  %v1122_v11 = vadd.f32 %v1121_v47, %v1100_v41 }
 0x353   : > { %v1172_v13 = vsel %vm1171_vm10, %v2547_v21, %v1170_v17  ;;  %v1173_v30 = vsel %vm1171_vm10, %v1170_v17, %v2547_v21  ;;  %v1175_v17 = vld [vmem:[#allocation5 + $0x9c] sm:$0xf] }
 0x354   : > { %v1178_v21 = vcombine.low %v1172_v13, %v1173_v30 }
 0x356   : > { %v1192_v49 = vpop.permute.xlu1 %1191  ;;  %v1185_v57 = vrot.slane %v1178_v21, %v2339_v40  ;;  %v1322_v51 = vpop.permute.xlu0 %1321 }
 0x357   : > { %v1194_v35 = vsel %vm1193_vm11, %v2554_v4, %v1192_v49  ;;  %v1195_v10 = vsel %vm1193_vm11, %v1192_v49, %v2554_v4  ;;  %v1153_v4 = vld [vmem:[#allocation5 + $0x98] sm:$0xf]  ;;  %v1144_v49 = vadd.f32 %v1143_v42, %v1122_v11 }
 0x358   : > { %v1200_v23 = vcombine.low %v1194_v35, %v1195_v10  ;;  %v1165_v48 = vmul.f32 %v1163_v16, %v1153_v4  ;;  %v1187_v39 = vmul.f32 %v1185_v57, %v1175_v17 }
 0x35a   : > { %v1214_v1 = vpop.permute.xlu1 %1213  ;;  %v1207_v55 = vrot.slane %v1200_v23, %v2339_v40  ;;  %v1166_v59 = vadd.f32 %v1165_v48, %v1144_v49  ;;  %v1344_v29 = vpop.permute.xlu0 %1343  ;;  %v1373_v48 = vld [vmem:[#allocation5 + $0xc0] sm:$0xf] }
 0x35b   : > { %v1216_v5 = vsel %vm1215_vm12, %v2563_v38, %v1214_v1  ;;  %v1217_v58 = vsel %vm1215_vm12, %v1214_v1, %v2563_v38 }
 0x35c   : > { %v1222_v38 = vcombine.low %v1216_v5, %v1217_v58  ;;  %v1188_v27 = vadd.f32 %v1187_v39, %v1166_v59  ;;  %v1329_v58 = vld [vmem:[#allocation5 + $0xb8] sm:$0xf]  ;;  %v1405_v59 = vsub.s32 2, %v2021_v6 }
 0x35e   : > { %v1236_v9 = vpop.permute.xlu1 %1235  ;;  %v1229_v33 = vrot.slane %v1222_v38, %v2339_v40 }
 0x35f   : > { %v1238_v28 = vsel %vm1237_vm13, %v2571_v43, %v1236_v9  ;;  %v1239_v53 = vsel %vm1237_vm13, %v1236_v9, %v2571_v43 }
 0x360   : > { %v1244_v54 = vcombine.low %v1238_v28, %v1239_v53  ;;  %v1231_v45 = vmul.f32 %v1229_v33, %v1219_v19  ;;  %v1351_v28 = vld [vmem:[#allocation5 + $0xbc] sm:$0xf]  ;;  %v1366_v53 = vpop.permute.xlu0 %1365  ;;  %v1401_v19 = vsub.s32 0, %v2021_v6 }
 0x362   : > { %v1258_v14 = vpop.permute.xlu1 %1257  ;;  %v1251_v0 = vrot.slane %v1244_v54, %v2339_v40 }
 0x363   : > { %v1260_v56 = vsel %vm1259_vm14, %v1256_v20, %v1258_v14  ;;  %v1261_v18 = vsel %vm1259_vm14, %v1258_v14, %v1256_v20  ;;  %v1209_v20 = vmul.f32 %v1207_v55, %v1197_v44 }
 0x364   : > { %v1266_v34 = vcombine.low %v1260_v56, %v1261_v18  ;;  %v1253_v13 = vmul.f32 %v1251_v0, %v1241_v52 }
 0x365   : > { %v1210_v22 = vadd.f32 %v1209_v20, %v1188_v27 }
 0x366   : > { %v1280_v50 = vpop.permute.xlu1 %1279  ;;  %v1273_v8 = vrot.slane %v1266_v34, %v2339_v40 }
 0x367   : > { %v1282_v43 = vsel %vm1281_vm15, %v1278_v2, %v1280_v50  ;;  %v1283_v60 = vsel %vm1281_vm15, %v1280_v50, %v1278_v2  ;;  %v1232_v9 = vadd.f32 %v1231_v45, %v1210_v22 }
 0x368   : > { %v1288_v15 = vcombine.low %v1282_v43, %v1283_v60  ;;  %v1275_v35 = vmul.f32 %v1273_v8, %v1263_v25 }
 0x369   : > { %v1254_v32 = vadd.f32 %v1253_v13, %v1232_v9 }
 0x36a   : > { %v1302_v46 = vpop.permute.xlu1 %1301  ;;  %v1295_v30 = vrot.slane %v1288_v15, %v2339_v40 }
 0x36b   : > { %v1304_v1 = vsel %vm1303_vm0, %v1300_v24, %v1302_v46  ;;  %v1305_v26 = vsel %vm1303_vm0, %v1302_v46, %v1300_v24  ;;  %v1276_v23 = vadd.f32 %v1275_v35, %v1254_v32 }
 0x36c   : > { %v1310_v12 = vcombine.low %v1304_v1, %v1305_v26  ;;  %v1297_v21 = vmul.f32 %v1295_v30, %v1285_v63 }
 0x36e   : > { %v1324_v62 = vpop.permute.xlu1 %1323  ;;  %v1317_v10 = vrot.slane %v1310_v12, %v2339_v40  ;;  %v1298_v41 = vadd.f32 %v1297_v21, %v1276_v23 }
 0x36f   : > { %v1326_v31 = vsel %vm1325_vm1, %v1322_v51, %v1324_v62  ;;  %v1327_v2 = vsel %vm1325_vm1, %v1324_v62, %v1322_v51 }
 0x370   : > { %v1332_v3 = vcombine.low %v1326_v31, %v1327_v2  ;;  %v1319_v14 = vmul.f32 %v1317_v10, %v1307_v37 }
 0x372   : > { %v1339_v61 = vrot.slane %v1332_v3, %v2339_v40  ;;  %v1346_v5 = vpop.permute.xlu1 %1345  ;;  %v1320_v56 = vadd.f32 %v1319_v14, %v1298_v41 }
 0x373   : > { %v1348_v47 = vsel %vm1347_vm2, %v1344_v29, %v1346_v5  ;;  %v1349_v16 = vsel %vm1347_vm2, %v1346_v5, %v1344_v29 }
 0x374   : > { %v1354_v4 = vcombine.low %v1348_v47, %v1349_v16  ;;  %v1341_v42 = vmul.f32 %v1339_v61, %v1329_v58 }
 0x376   : > { %v1361_v57 = vrot.slane %v1354_v4, %v2339_v40  ;;  %v1368_v24 = vpop.permute.xlu1 %1367  ;;  %v1342_v55 = vadd.f32 %v1341_v42, %v1320_v56 }
 0x377   : > { %v1370_v38 = vsel %vm1369_vm3, %v1366_v53, %v1368_v24  ;;  %v1371_v17 = vsel %vm1369_vm3, %v1368_v24, %v1366_v53 }
 0x378   : > { %v1363_v18 = vmul.f32 %v1361_v57, %v1351_v28  ;;  %v1376_v11 = vcombine.low %v1370_v38, %v1371_v17 }
 0x37a   : > { %v1383_v54 = vrot.slane %v1376_v11, %v2339_v40  ;;  %v1364_v50 = vadd.f32 %v1363_v18, %v1342_v55 }
 0x37c   : > { %v1385_v44 = vmul.f32 %v1383_v54, %v1373_v48 }
 0x37e   : > { %v1386_v43 = vadd.f32 %v1385_v44, %v1364_v50 }
 0x380   : > { %v1529_v7 = vrot.slane %v1386_v43, 9 }
 0x382   : > { %v1391_v60 = vadd.f32 %v1529_v7, %v1386_v43 }
 0x384   : > { %v1392_v49 = vsub.f32 0.0, %v1391_v60 }
 0x386   : > { %v1393_v39 = vmul.f32 1.442695, %v1392_v49 }
 0x388   : > { %1654 = vpow2.f32 %v1393_v39 }
 0x392   : > { %v1655_v33 = vpop.eup %1654 }
 0x393   : > { %v1395_v34 = vadd.f32 1.0, %v1655_v33 }
 0x395   : > { %1656 = vrcp.f32 %v1395_v34 }
 0x39f   : > { %v1657_v20 = vpop.eup %1656 }
 0x3a0   : > { %v1402_v40 = vrot.slane %v1657_v20, %v1401_v19  ;;  %v1406_v51 = vrot.slane %v1657_v20, %v1405_v59 }
 0x3a2   : > { %v1412_v0 = vrot.slane %v1402_v40, %v1401_v19  ;;  %v1416_v15 = vrot.slane %v1406_v51, %v1401_v19 }
 0x3a4   : > { %v1419_v46 = vcombine.low %v1412_v0, %v1416_v15 }
 0x3a6   : > { %v1421_v52 = vmul.f32 %v1419_v46, %v2034_v36 }
 0x3a8   : > { %1422 = vst [vmem:[%s228_s5] sm:$0xff] %v1421_v52 }
 0x3a9   : > { %1729 = shalt.err (!%p1726_p7)
}
 0x3aa   : > { %s1730_s25 = scalar_lea.hbm %s2633_s12, 128  ;;  %s1734_s28 = scalar_lea.hbm %s2681_s4, 256 }
 0x3ab   : > { %p1731_p9 = scmp.ne.s32.totalorder %s2633_s12, %s1730_s25  ;;  %p1735_p0 = scmp.lt.u32.totalorder %s2633_s12, %s2681_s4 }
 0x3ac   : > { %p1736_p11 = scmp.lt.u32.totalorder %s1734_s28, %s1730_s25  ;;  %p1738_p4 = scmp.lt.u32.totalorder %s1730_s25, %s2633_s12 }
 0x3ad   : > { %p1732_p2 = pnand %p1731_p9, %p1960_p12 }
 0x3ae   : > { %p1737_p1 = por %p1736_p11, %p1735_p0 }
 0x3af   : > { %p1733_p5 = pneg %p1732_p2 }
 0x3b0   : > { %p1739_p6 = por %p1738_p4, %p1737_p1 }
 0x3b2   : > { %p1740_p8 = pnand %p1739_p6, %p1733_p5 }
 0x3b4   : > { %1743 = shalt.err (!%p1740_p8)
}
 0x3b5   : > { %1543 = dma.vmem_to_hbm [thread:$0]  (%p1960_p12), %s2635_s7, 128, %s2633_s12, %s1424_s13  }
 0x3b6 PF: > { %s1450_s14 = sand.u32 1, %s1774_s15   ;;  %p2703_p10 = scmp.ne.s32.totalorder %s2686_s22, 0 }
 0x3b7   : > { %p2704_p13 = scmp.ge.s32.totalorder %s1786_s18, 2  ;;  %s1451_s6 = scalar_lea.sflag [#allocation4], %s1450_s14 }
 0x3b9   : > { %p1554_p3 = pnand %p2704_p13, %p2703_p10 }
 0x3bb   : > { %1769 = dma.done.wait (!%p1554_p3), %s1451_s6, 128  }
 0x3bc   : > { %1771 = vsyncadd (!%p1554_p3), %s1451_s6, 4294967168  ;;  %p18_p7 = scmp.ge.s32.totalorder %s1925_s27, 4   ;;  %s2705_s15 = smov %s1778_s16 }
 0x3bd   : > { %s2706_s16 = smov %s1782_s17  ;;  %s2707_s17 = smov %s1956_s24 }
 0x3be   : > { %s2708_s18 = smov %s1925_s27  ;;  %20 = sbr.rel (!%p18_p7) target bundleno = 6 (0x6), region = 133 }
 0x3c5   :  { %1456 = vsyncpa [#allocation3], 1 }
 0x3c6   :  { %1458 = vsyncpa [#allocation3 + $0x1], 1 }
 0x3c7   :  { %1459 = vsyncpa [#allocation6], 1 }
 0x3c8   :  { %1460 = vsyncpa [#allocation4], 1 }
 0x3c9   :  { %1462 = vsyncpa [#allocation4 + $0x1], 1 }

</bundles_post_ra>
